<compile_context>
chip_gen: v7x
topology: tpu7x:2x2x1
jax: 0.10.0
libtpu: 0.0.40
codegen_flags: <defaults>
</compile_context>

<pallas_src>
import functools

import jax
import jax.numpy as jnp
from jax import lax
from jax.experimental import pallas as pl
from jax.experimental.pallas import tpu as pltpu


# ----------------------------- TPU / VMEM helpers -----------------------------


def _vmem_capacity_bytes():
    try:
        return int(pltpu.get_tpu_info().vmem_capacity_bytes)
    except Exception:
        return 64 * 1024 * 1024  # conservative fallback (v7x per-TC VMEM)


def _vmem_budget_bytes():
    cap = _vmem_capacity_bytes()
    # v6e/v5e (128 MiB) can afford a bigger working set than v7x (64 MiB).
    frac = 0.45 if cap >= 96 * 1024 * 1024 else 0.28
    return int(cap * frac)


def _compiler_params():
    return pltpu.CompilerParams(
        dimension_semantics=("parallel", "parallel"),
        vmem_limit_bytes=int(_vmem_capacity_bytes() * 0.5),
    )


def _pick_row_tile(N, Ho, Wo, H, W, Cin, P, Co, stride, itm):
    """Pick the output-row tile Th (a divisor of Ho): largest tile that fits the
    VMEM budget while still giving >= 4 grid steps when possible (pipelining +
    2 steps per TensorCore on v7x megacore)."""
    budget = _vmem_budget_bytes()
    divs = [d for d in range(Ho, 0, -1) if Ho % d == 0]

    fixed = 2 * H * W * Cin * itm                                   # resident input block
    fixed += 2 * ((Cin * P + 9 * P * P + P * Co + Cin * Co) * itm   # weights
                  + (2 * P + Co) * 4)                               # f32 biases

    def usage(th):
        m = th * Wo
        if stride == 1:
            rows = min(th + 2, H)
            scratch = (th + 4) * (W + 2) * P * itm
            band = rows * W
        else:
            rows = min(th + 1, Ho)
            scratch = 4 * (th + 2) * (Wo + 1) * P * itm
            band = (2 * th + 2 * rows) * Wo                         # 4 phase blocks
        temps = band * (Cin * itm + P * 4)                          # conv1 in / f32 acc
        temps += 2 * m * 9 * P * itm                                # im2col slab (+ temp)
        temps += m * (P * 4 + Co * 4 + Cin * itm)                   # conv2/3 accs, shortcut
        out = 2 * m * Co * 4
        return fixed + scratch + temps + out

    fitting = [d for d in divs if usage(d) <= budget]
    if not fitting:
        return divs[-1]
    for d in fitting:
        if N * (Ho // d) >= 4:
            return d
    return fitting[0]


# ------------------------------- fused kernels --------------------------------


def _bottleneck_s1_kernel(x_ref, w1_ref, b1_ref, w2_ref, b2_ref, w3_ref,
                          b3_ref, *args, Th, H, W, P, Co, has_proj):
    """Fully fused Bottleneck, stride=1.  Grid = (N, Ho//Th)."""
    if has_proj:
        wsc_ref, o_ref, a1 = args
    else:
        o_ref, a1 = args

    t = pl.program_id(1)
    r0 = t * Th
    Wo = W
    Rrd = min(Th + 2, H)
    Cin = x_ref.shape[-1]

    # zero-padded conv1-output scratch: row i <-> padded row (r0 + i - 1)
    a1[...] = jnp.zeros_like(a1)

    # ---- conv1 (1x1) + BN bias + ReLU on the row band this tile needs
    xr = jnp.clip(r0 - 1, 0, H - Rrd)
    xband = x_ref[0, pl.ds(xr, Rrd), :, :]                          # (Rrd, W, Cin)
    a = jnp.dot(xband.reshape(Rrd * W, Cin), w1_ref[...],
                preferred_element_type=jnp.float32) + b1_ref[...]
    a = jnp.maximum(a, 0.0).astype(a1.dtype).reshape(Rrd, W, P)
    dest = xr - r0 + 2
    a1[pl.ds(dest, Rrd), pl.ds(1, W), :] = a

    # ---- conv2 (3x3, pad=1) as ONE fat matmul over an in-VMEM im2col slab
    taps = []
    for ky in range(3):
        for kx in range(3):
            tap = a1[pl.ds(ky + 1, Th), pl.ds(kx, Wo), :]           # contiguous slice
            taps.append(tap.reshape(Th * Wo, P))
    slab = jnp.concatenate(taps, axis=-1)                           # (Th*Wo, 9P)
    y2 = jnp.dot(slab, w2_ref[...], preferred_element_type=jnp.float32) + b2_ref[...]
    y2 = jnp.maximum(y2, 0.0).astype(a1.dtype)

    # ---- conv3 (1x1) + shortcut + ReLU (shortcut read from the resident x block)
    y3 = jnp.dot(y2, w3_ref[...], preferred_element_type=jnp.float32) + b3_ref[...]
    xs = x_ref[0, pl.ds(r0, Th), :, :].reshape(Th * W, Cin)
    if has_proj:
        y3 = y3 + jnp.dot(xs, wsc_ref[...], preferred_element_type=jnp.float32)
    else:
        y3 = y3 + xs.astype(jnp.float32)
    o_ref[0] = jnp.maximum(y3, 0.0).reshape(Th, Wo, Co).astype(o_ref.dtype)


def _bottleneck_s2_kernel(xph_ref, w1_ref, b1_ref, w2_ref, b2_ref, w3_ref,
                          b3_ref, wsc_ref, o_ref, a1, *, Th, Ho, Wo, P, Co):
    """Fully fused Bottleneck, stride=2.  Input is the 2x2 phase view of x so
    every in-kernel access is a contiguous slice.  Grid = (N, Ho//Th)."""
    t = pl.program_id(1)
    r0 = t * Th
    Cin = xph_ref.shape[-1]

    # conv1-output scratch per (row-phase, col-phase), zero pad baked in.
    a1[...] = jnp.zeros_like(a1)

    # ---- conv1 (1x1) + BN bias + ReLU on all four phases, one fused matmul
    blocks, metas = [], []
    for p in range(2):
        nrows = min(Th + p, Ho)             # p=1 also needs the row above the tile
        rbase = r0 - p
        xstart = jnp.clip(rbase, 0, Ho - nrows)
        dest = xstart - rbase               # 0, or 1 when clamped at the top edge
        for q in range(2):
            xb = xph_ref[0, p * 2 + q, pl.ds(xstart, nrows), :, :]  # (nrows, Wo, Cin)
            blocks.append(xb.reshape(nrows * Wo, Cin))
            metas.append((p, q, dest, nrows))
    xcat = jnp.concatenate(blocks, axis=0)
    acat = jnp.dot(xcat, w1_ref[...], preferred_element_type=jnp.float32) + b1_ref[...]
    acat = jnp.maximum(acat, 0.0).astype(a1.dtype)
    off = 0
    for (p, q, dest, nrows) in metas:
        blk = acat[off:off + nrows * Wo].reshape(nrows, Wo, P)
        a1[p * 2 + q, pl.ds(dest, nrows), pl.ds(q, Wo), :] = blk
        off += nrows * Wo

    # ---- conv2 (3x3, stride 2, pad=1): 9 contiguous taps -> one fat matmul
    prow = (1, 0, 1)
    pcol = (1, 0, 1)
    roff = (0, 0, 1)
    coff = (0, 0, 1)
    taps = []
    for ky in range(3):
        for kx in range(3):
            tap = a1[prow[ky] * 2 + pcol[kx],
                     pl.ds(roff[ky], Th), pl.ds(coff[kx], Wo), :]
            taps.append(tap.reshape(Th * Wo, P))
    slab = jnp.concatenate(taps, axis=-1)                           # (Th*Wo, 9P)
    y2 = jnp.dot(slab, w2_ref[...], preferred_element_type=jnp.float32) + b2_ref[...]
    y2 = jnp.maximum(y2, 0.0).astype(a1.dtype)

    # ---- conv3 (1x1) + projection shortcut (phase (0,0) == x[::2, ::2]) + ReLU
    y3 = jnp.dot(y2, w3_ref[...], preferred_element_type=jnp.float32) + b3_ref[...]
    xs = xph_ref[0, 0, pl.ds(r0, Th), :, :].reshape(Th * Wo, Cin)
    y3 = y3 + jnp.dot(xs, wsc_ref[...], preferred_element_type=jnp.float32)
    o_ref[0] = jnp.maximum(y3, 0.0).reshape(Th, Wo, Co).astype(o_ref.dtype)


# -------------------------------- parameters ----------------------------------


def _bn_fold(gamma, beta, mean, var, eps=1e-5):
    scale = gamma / jnp.sqrt(var + eps)
    bias = beta - mean * scale
    return scale, bias


def init_bottleneck_params(key, in_planes, planes, stride):
    """Deterministic synthetic parameters matching the nn.Module shapes."""
    expansion = 4
    out_planes = expansion * planes
    keys = jax.random.split(key, 8)

    def conv1x1_w(k, cin, cout):
        return jax.random.normal(k, (cin, cout), jnp.float32) * 0.1

    def bn(k, c):
        kg, kb, km, kv = jax.random.split(k, 4)
        gamma = 1.0 + 0.1 * jax.random.normal(kg, (c,), jnp.float32)
        beta = 0.1 * jax.random.normal(kb, (c,), jnp.float32)
        mean = 0.1 * jax.random.normal(km, (c,), jnp.float32)
        var = jnp.abs(jax.random.normal(kv, (c,), jnp.float32)) + 0.5
        return gamma, beta, mean, var

    params = {
        "w1": conv1x1_w(keys[0], in_planes, planes),
        "bn1": bn(keys[1], planes),
        "w2": jax.random.normal(keys[2], (3, 3, planes, planes), jnp.float32) * 0.1,
        "bn2": bn(keys[3], planes),
        "w3": conv1x1_w(keys[4], planes, out_planes),
        "bn3": bn(keys[5], out_planes),
    }
    if stride != 1 or in_planes != out_planes:
        params["w_sc"] = conv1x1_w(keys[6], in_planes, out_planes)
        params["bn_sc"] = bn(keys[7], out_planes)
    return params


def prepare_params(params, compute_dtype=jnp.bfloat16):
    """Fold inference-mode BN scales into the conv weights, pre-add the conv3
    and shortcut biases, cast weights to the compute dtype (biases stay f32)."""
    P = params["w1"].shape[1]
    s1, b1 = _bn_fold(*params["bn1"])
    s2, b2 = _bn_fold(*params["bn2"])
    s3, b3 = _bn_fold(*params["bn3"])
    prep = {
        "w1": (params["w1"] * s1[None, :]).astype(compute_dtype),
        "b1": b1,
        "w2": (params["w2"] * s2[None, None, None, :]).reshape(9 * P, P).astype(compute_dtype),
        "b2": b2,
        "w3": (params["w3"] * s3[None, :]).astype(compute_dtype),
    }
    if "w_sc" in params:
        ssc, bsc = _bn_fold(*params["bn_sc"])
        prep["w_sc"] = (params["w_sc"] * ssc[None, :]).astype(compute_dtype)
        prep["b3c"] = b3 + bsc          # conv3 bias and shortcut-BN bias fused
    else:
        prep["b3c"] = b3
    return prep


# -------------------------------- forward pass ---------------------------------


def bottleneck_forward_nhwc(x_nhwc, prep, stride, compute_dtype=jnp.bfloat16,
                            out_dtype=jnp.float32):
    """NHWC-native fused Bottleneck.forward."""
    N, H, W, Cin = x_nhwc.shape
    P = prep["w1"].shape[1]
    Co = prep["w3"].shape[1]
    s = stride
    if s not in (1, 2):
        raise NotImplementedError("TODO(synk): only stride in {1, 2} is implemented")
    Ho = (H - 1) // s + 1
    Wo = (W - 1) // s + 1
    has_proj = "w_sc" in prep
    itm = jnp.dtype(compute_dtype).itemsize

    x = x_nhwc.astype(compute_dtype)
    Th = _pick_row_tile(N, Ho, Wo, H, W, Cin, P, Co, s, itm)
    T = Ho // Th

    b1 = prep["b1"].reshape(1, P).astype(jnp.float32)
    b2 = prep["b2"].reshape(1, P).astype(jnp.float32)
    b3 = prep["b3c"].reshape(1, Co).astype(jnp.float32)

    w_specs = [
        pl.BlockSpec((Cin, P), lambda n, t: (0, 0)),
        pl.BlockSpec((1, P), lambda n, t: (0, 0)),
        pl.BlockSpec((9 * P, P), lambda n, t: (0, 0)),
        pl.BlockSpec((1, P), lambda n, t: (0, 0)),
        pl.BlockSpec((P, Co), lambda n, t: (0, 0)),
        pl.BlockSpec((1, Co), lambda n, t: (0, 0)),
    ]

    if s == 1:
        kern = functools.partial(_bottleneck_s1_kernel, Th=Th, H=H, W=W, P=P,
                                 Co=Co, has_proj=has_proj)
        in_arrays = [x, prep["w1"], b1, prep["w2"], b2, prep["w3"], b3]
        in_specs = [pl.BlockSpec((1, H, W, Cin), lambda n, t: (n, 0, 0, 0))] + w_specs
        if has_proj:
            in_arrays.append(prep["w_sc"])
            in_specs.append(pl.BlockSpec((Cin, Co), lambda n, t: (0, 0)))
        scratch = [pltpu.VMEM((Th + 4, W + 2, P), compute_dtype)]
    else:
        if H % 2 or W % 2:
            raise NotImplementedError(
                "TODO(synk): odd spatial dims with stride=2 not implemented")
        # One XLA pass: 2x2 phase view of x (same bytes as x, no blow-up).
        xph = x.reshape(N, Ho, 2, Wo, 2, Cin).transpose(0, 2, 4, 1, 3, 5)
        xph = xph.reshape(N, 4, Ho, Wo, Cin)
        kern = functools.partial(_bottleneck_s2_kernel, Th=Th, Ho=Ho, Wo=Wo,
                                 P=P, Co=Co)
        in_arrays = [xph, prep["w1"], b1, prep["w2"], b2, prep["w3"], b3,
                     prep["w_sc"]]
        in_specs = ([pl.BlockSpec((1, 4, Ho, Wo, Cin), lambda n, t: (n, 0, 0, 0, 0))]
                    + w_specs
                    + [pl.BlockSpec((Cin, Co), lambda n, t: (0, 0))])
        scratch = [pltpu.VMEM((4, Th + 2, Wo + 1, P), compute_dtype)]

    out = pl.pallas_call(
        kern,
        out_shape=jax.ShapeDtypeStruct((N, Ho, Wo, Co), out_dtype),
        grid_spec=pltpu.PrefetchScalarGridSpec(
            num_scalar_prefetch=0,
            grid=(N, T),
            in_specs=in_specs,
            out_specs=pl.BlockSpec((1, Th, Wo, Co), lambda n, t: (n, t, 0, 0)),
            scratch_shapes=scratch,
        ),
        compiler_params=_compiler_params(),
    )(*in_arrays)
    return out


def bottleneck_forward(x_nchw, params, stride, compute_dtype=jnp.bfloat16):
    """NCHW wrapper matching the PyTorch module I/O."""
    prep = prepare_params(params, compute_dtype)
    x = jnp.transpose(x_nchw, (0, 2, 3, 1))            # -> NHWC
    out = bottleneck_forward_nhwc(x, prep, stride, compute_dtype)
    return jnp.transpose(out, (0, 3, 1, 2))            # -> NCHW


# ------------------------------ pure-JAX reference ------------------------------


def bottleneck_reference(x_nchw, params, stride):
    def conv1x1(x, w, st=1):
        w4 = jnp.transpose(w, (1, 0)).reshape(w.shape[1], w.shape[0], 1, 1)
        return lax.conv_general_dilated(
            x, w4, (st, st), "VALID", dimension_numbers=("NCHW", "OIHW", "NCHW"))

    def conv3x3(x, w, st):
        w4 = jnp.transpose(w, (3, 2, 0, 1))
        return lax.conv_general_dilated(
            x, w4, (st, st), ((1, 1), (1, 1)),
            dimension_numbers=("NCHW", "OIHW", "NCHW"))

    def bn(x, p):
        scale, bias = _bn_fold(*p)
        return x * scale[None, :, None, None] + bias[None, :, None, None]

    out = jax.nn.relu(bn(conv1x1(x_nchw, params["w1"]), params["bn1"]))
    out = jax.nn.relu(bn(conv3x3(out, params["w2"], stride), params["bn2"]))
    out = bn(conv1x1(out, params["w3"]), params["bn3"])
    if "w_sc" in params:
        sc = bn(conv1x1(x_nchw, params["w_sc"], stride), params["bn_sc"])
    else:
        sc = x_nchw
    return jax.nn.relu(out + sc)


# ------------------------------------ main --------------------------------------


if __name__ == "__main__":
    key = jax.random.PRNGKey(0)

    # case 1: strided block with projection shortcut; case 2: identity shortcut
    cases = ((64, 32, 2), (128, 32, 1))
    N, H, W = 2, 16, 16

    for in_planes, planes, stride in cases:
        key, kx, kp = jax.random.split(key, 3)
        x = jax.random.normal(kx, (N, in_planes, H, W), jnp.float32)
        params = init_bottleneck_params(kp, in_planes, planes, stride)

        out = jax.block_until_ready(bottleneck_forward(x, params, stride))
        Ho = (H - 1) // stride + 1
        assert out.shape == (N, 4 * planes, Ho, Ho), out.shape

        ref = bottleneck_reference(x, params, stride)
        err = float(jnp.max(jnp.abs(out - ref)))
        tol = 0.05 * max(1.0, float(jnp.max(jnp.abs(ref))))   # bf16-compute tolerance
        if err > tol:
            raise SystemExit(
                f"mismatch (in={in_planes}, planes={planes}, stride={stride}): "
                f"max abs err {err} > tol {tol}")

    print("KERNEL_OK")
</pallas_src>

<mosaic_0001>
module attributes {stable_mosaic.version = 11 : i64} {
  func.func @_bottleneck_s2_kernel(%arg0: i32, %arg1: i32, %arg2: memref<1x4x8x8x64xbf16, #tpu.memory_space<vmem>>, %arg3: memref<64x32xbf16, #tpu.memory_space<vmem>>, %arg4: memref<1x32xf32, #tpu.memory_space<vmem>>, %arg5: memref<288x32xbf16, #tpu.memory_space<vmem>>, %arg6: memref<1x32xf32, #tpu.memory_space<vmem>>, %arg7: memref<32x128xbf16, #tpu.memory_space<vmem>>, %arg8: memref<1x128xf32, #tpu.memory_space<vmem>>, %arg9: memref<64x128xbf16, #tpu.memory_space<vmem>>, %arg10: memref<1x4x8x128xf32, #tpu.memory_space<vmem>>, %arg11: memref<4x6x9x32xbf16, #tpu.memory_space<vmem>>) attributes {dimension_semantics = [#tpu.dimension_semantics<parallel>, #tpu.dimension_semantics<parallel>], iteration_bounds = array<i64: 2, 2>, scalar_prefetch = 0 : i64, scratch_operands = 1 : i64, tpu.core_type = #tpu.core_type<tc>, window_params = [{transform_indices = @transform_0, window_bounds = array<i64: 1, 4, 8, 8, 64>}, {pipeline_mode = #tpu.pipeline_mode<synchronous>, transform_indices = @transform_1, window_bounds = array<i64: 64, 32>}, {pipeline_mode = #tpu.pipeline_mode<synchronous>, transform_indices = @transform_2, window_bounds = array<i64: 1, 32>}, {pipeline_mode = #tpu.pipeline_mode<synchronous>, transform_indices = @transform_3, window_bounds = array<i64: 288, 32>}, {pipeline_mode = #tpu.pipeline_mode<synchronous>, transform_indices = @transform_4, window_bounds = array<i64: 1, 32>}, {pipeline_mode = #tpu.pipeline_mode<synchronous>, transform_indices = @transform_5, window_bounds = array<i64: 32, 128>}, {pipeline_mode = #tpu.pipeline_mode<synchronous>, transform_indices = @transform_6, window_bounds = array<i64: 1, 128>}, {pipeline_mode = #tpu.pipeline_mode<synchronous>, transform_indices = @transform_7, window_bounds = array<i64: 64, 128>}, {transform_indices = @transform_8, window_bounds = array<i64: 1, 4, 8, 128>}]} {
    %c4_i32 = arith.constant 4 : i32
    %0 = arith.muli %arg1, %c4_i32 : i32
    %cst = arith.constant 0.000000e+00 : bf16
    %1 = vector.broadcast %cst : bf16 to vector<4x6x9x32xbf16>
    %c0 = arith.constant 0 : index
    %c0_0 = arith.constant 0 : index
    %c0_1 = arith.constant 0 : index
    %c0_2 = arith.constant 0 : index
    %2 = vector.load %arg11[%c0, %c0_0, %c0_1, %c0_2] : memref<4x6x9x32xbf16, #tpu.memory_space<vmem>>, vector<4x6x9x32xbf16>
    tpu.vector_store %arg11[%c0, %c0_0, %c0_1, %c0_2], %1 {strides = array<i32>} : memref<4x6x9x32xbf16, #tpu.memory_space<vmem>>, vector<4x6x9x32xbf16>,
    %c0_i32 = arith.constant 0 : i32
    %3 = arith.subi %0, %c0_i32 : i32
    %c0_i32_3 = arith.constant 0 : i32
    %c4_i32_4 = arith.constant 4 : i32
    %4 = arith.maxsi %c0_i32_3, %3 : i32
    %5 = arith.minsi %c4_i32_4, %4 : i32
    %6 = arith.subi %5, %3 : i32
    %c0_5 = arith.constant 0 : index
    %c0_6 = arith.constant 0 : index
    %7 = arith.index_cast %5 : i32 to index
    %c0_7 = arith.constant 0 : index
    %c0_8 = arith.constant 0 : index
    %8 = vector.load %arg2[%c0_5, %c0_6, %7, %c0_7, %c0_8] : memref<1x4x8x8x64xbf16, #tpu.memory_space<vmem>>, vector<1x1x4x8x64xbf16>
    %9 = vector.shape_cast %8 : vector<1x1x4x8x64xbf16> to vector<4x8x64xbf16>
    %10 = vector.shape_cast %9 : vector<4x8x64xbf16> to vector<32x64xbf16>
    %c0_9 = arith.constant 0 : index
    %c1 = arith.constant 1 : index
    %11 = arith.index_cast %5 : i32 to index
    %c0_10 = arith.constant 0 : index
    %c0_11 = arith.constant 0 : index
    %12 = vector.load %arg2[%c0_9, %c1, %11, %c0_10, %c0_11] : memref<1x4x8x8x64xbf16, #tpu.memory_space<vmem>>, vector<1x1x4x8x64xbf16>
    %13 = vector.shape_cast %12 : vector<1x1x4x8x64xbf16> to vector<4x8x64xbf16>
    %14 = vector.shape_cast %13 : vector<4x8x64xbf16> to vector<32x64xbf16>
    %c1_i32 = arith.constant 1 : i32
    %15 = arith.subi %0, %c1_i32 : i32
    %c0_i32_12 = arith.constant 0 : i32
    %c3_i32 = arith.constant 3 : i32
    %16 = arith.maxsi %c0_i32_12, %15 : i32
    %17 = arith.minsi %c3_i32, %16 : i32
    %18 = arith.subi %17, %15 : i32
    %c0_13 = arith.constant 0 : index
    %c2 = arith.constant 2 : index
    %19 = arith.index_cast %17 : i32 to index
    %c0_14 = arith.constant 0 : index
    %c0_15 = arith.constant 0 : index
    %20 = vector.load %arg2[%c0_13, %c2, %19, %c0_14, %c0_15] : memref<1x4x8x8x64xbf16, #tpu.memory_space<vmem>>, vector<1x1x5x8x64xbf16>
    %21 = vector.shape_cast %20 : vector<1x1x5x8x64xbf16> to vector<5x8x64xbf16>
    %22 = vector.shape_cast %21 : vector<5x8x64xbf16> to vector<40x64xbf16>
    %c0_16 = arith.constant 0 : index
    %c3 = arith.constant 3 : index
    %23 = arith.index_cast %17 : i32 to index
    %c0_17 = arith.constant 0 : index
    %c0_18 = arith.constant 0 : index
    %24 = vector.load %arg2[%c0_16, %c3, %23, %c0_17, %c0_18] : memref<1x4x8x8x64xbf16, #tpu.memory_space<vmem>>, vector<1x1x5x8x64xbf16>
    %25 = vector.shape_cast %24 : vector<1x1x5x8x64xbf16> to vector<5x8x64xbf16>
    %26 = vector.shape_cast %25 : vector<5x8x64xbf16> to vector<40x64xbf16>
    %27 = tpu.concatenate %10, %14, %22, %26 in 0 : vector<32x64xbf16>, vector<32x64xbf16>, vector<40x64xbf16>, vector<40x64xbf16> -> vector<144x64xbf16>
    %c0_19 = arith.constant 0 : index
    %c0_20 = arith.constant 0 : index
    %28 = vector.load %arg3[%c0_19, %c0_20] : memref<64x32xbf16, #tpu.memory_space<vmem>>, vector<64x32xbf16>
    %cst_21 = arith.constant dense<0.000000e+00> : vector<144x32xf32>
    %29 = tpu.matmul %27, %28, %cst_21 {dimension_numbers = #tpu.dot_dimension_numbers<[1], [0], [0], [1], [0, 0, 1, 1], [], []>} : vector<144x64xbf16>, vector<64x32xbf16>, vector<144x32xf32> -> vector<144x32xf32>
    %c0_22 = arith.constant 0 : index
    %c0_23 = arith.constant 0 : index
    %30 = vector.load %arg4[%c0_22, %c0_23] : memref<1x32xf32, #tpu.memory_space<vmem>>, vector<1x32xf32>
    %31 = vector.broadcast %30 : vector<1x32xf32> to vector<144x32xf32>
    %32 = arith.addf %29, %31 : vector<144x32xf32>
    %cst_24 = arith.constant 0.000000e+00 : f32
    %33 = vector.broadcast %cst_24 : f32 to vector<144x32xf32>
    %34 = arith.maximumf %32, %33 : vector<144x32xf32>
    %35 = arith.truncf %34 : vector<144x32xf32> to vector<144x32xbf16>
    %36 = vector.extract_strided_slice %35 {offsets = [0, 0], sizes = [32, 32], strides = [1, 1]} : vector<144x32xbf16> to vector<32x32xbf16>
    %37 = vector.shape_cast %36 : vector<32x32xbf16> to vector<4x8x32xbf16>
    %c0_25 = arith.constant 0 : index
    %38 = arith.index_cast %6 : i32 to index
    %c0_26 = arith.constant 0 : index
    %c0_27 = arith.constant 0 : index
    %39 = vector.load %arg11[%c0_25, %38, %c0_26, %c0_27] : memref<4x6x9x32xbf16, #tpu.memory_space<vmem>>, vector<1x4x8x32xbf16>
    %40 = vector.shape_cast %39 : vector<1x4x8x32xbf16> to vector<4x8x32xbf16>
    %41 = vector.shape_cast %37 : vector<4x8x32xbf16> to vector<1x4x8x32xbf16>
    tpu.vector_store %arg11[%c0_25, %38, %c0_26, %c0_27], %41 {strides = array<i32>} : memref<4x6x9x32xbf16, #tpu.memory_space<vmem>>, vector<1x4x8x32xbf16>,
    %42 = vector.extract_strided_slice %35 {offsets = [32, 0], sizes = [32, 32], strides = [1, 1]} : vector<144x32xbf16> to vector<32x32xbf16>
    %43 = vector.shape_cast %42 : vector<32x32xbf16> to vector<4x8x32xbf16>
    %c1_28 = arith.constant 1 : index
    %44 = arith.index_cast %6 : i32 to index
    %c1_29 = arith.constant 1 : index
    %c0_30 = arith.constant 0 : index
    %45 = vector.load %arg11[%c1_28, %44, %c1_29, %c0_30] : memref<4x6x9x32xbf16, #tpu.memory_space<vmem>>, vector<1x4x8x32xbf16>
    %46 = vector.shape_cast %45 : vector<1x4x8x32xbf16> to vector<4x8x32xbf16>
    %47 = vector.shape_cast %43 : vector<4x8x32xbf16> to vector<1x4x8x32xbf16>
    tpu.vector_store %arg11[%c1_28, %44, %c1_29, %c0_30], %47 {strides = array<i32>} : memref<4x6x9x32xbf16, #tpu.memory_space<vmem>>, vector<1x4x8x32xbf16>,
    %48 = vector.extract_strided_slice %35 {offsets = [64, 0], sizes = [40, 32], strides = [1, 1]} : vector<144x32xbf16> to vector<40x32xbf16>
    %49 = vector.shape_cast %48 : vector<40x32xbf16> to vector<5x8x32xbf16>
    %c2_31 = arith.constant 2 : index
    %50 = arith.index_cast %18 : i32 to index
    %c0_32 = arith.constant 0 : index
    %c0_33 = arith.constant 0 : index
    %51 = vector.load %arg11[%c2_31, %50, %c0_32, %c0_33] : memref<4x6x9x32xbf16, #tpu.memory_space<vmem>>, vector<1x5x8x32xbf16>
    %52 = vector.shape_cast %51 : vector<1x5x8x32xbf16> to vector<5x8x32xbf16>
    %53 = vector.shape_cast %49 : vector<5x8x32xbf16> to vector<1x5x8x32xbf16>
    tpu.vector_store %arg11[%c2_31, %50, %c0_32, %c0_33], %53 {strides = array<i32>} : memref<4x6x9x32xbf16, #tpu.memory_space<vmem>>, vector<1x5x8x32xbf16>,
    %54 = vector.extract_strided_slice %35 {offsets = [104, 0], sizes = [40, 32], strides = [1, 1]} : vector<144x32xbf16> to vector<40x32xbf16>
    %55 = vector.shape_cast %54 : vector<40x32xbf16> to vector<5x8x32xbf16>
    %c3_34 = arith.constant 3 : index
    %56 = arith.index_cast %18 : i32 to index
    %c1_35 = arith.constant 1 : index
    %c0_36 = arith.constant 0 : index
    %57 = vector.load %arg11[%c3_34, %56, %c1_35, %c0_36] : memref<4x6x9x32xbf16, #tpu.memory_space<vmem>>, vector<1x5x8x32xbf16>
    %58 = vector.shape_cast %57 : vector<1x5x8x32xbf16> to vector<5x8x32xbf16>
    %59 = vector.shape_cast %55 : vector<5x8x32xbf16> to vector<1x5x8x32xbf16>
    tpu.vector_store %arg11[%c3_34, %56, %c1_35, %c0_36], %59 {strides = array<i32>} : memref<4x6x9x32xbf16, #tpu.memory_space<vmem>>, vector<1x5x8x32xbf16>,
    %c3_37 = arith.constant 3 : index
    %c0_38 = arith.constant 0 : index
    %c0_39 = arith.constant 0 : index
    %c0_40 = arith.constant 0 : index
    %60 = vector.load %arg11[%c3_37, %c0_38, %c0_39, %c0_40] : memref<4x6x9x32xbf16, #tpu.memory_space<vmem>>, vector<1x4x8x32xbf16>
    %61 = vector.shape_cast %60 : vector<1x4x8x32xbf16> to vector<4x8x32xbf16>
    %62 = vector.shape_cast %61 : vector<4x8x32xbf16> to vector<32x32xbf16>
    %c2_41 = arith.constant 2 : index
    %c0_42 = arith.constant 0 : index
    %c0_43 = arith.constant 0 : index
    %c0_44 = arith.constant 0 : index
    %63 = vector.load %arg11[%c2_41, %c0_42, %c0_43, %c0_44] : memref<4x6x9x32xbf16, #tpu.memory_space<vmem>>, vector<1x4x8x32xbf16>
    %64 = vector.shape_cast %63 : vector<1x4x8x32xbf16> to vector<4x8x32xbf16>
    %65 = vector.shape_cast %64 : vector<4x8x32xbf16> to vector<32x32xbf16>
    %c3_45 = arith.constant 3 : index
    %c0_46 = arith.constant 0 : index
    %c1_47 = arith.constant 1 : index
    %c0_48 = arith.constant 0 : index
    %66 = vector.load %arg11[%c3_45, %c0_46, %c1_47, %c0_48] : memref<4x6x9x32xbf16, #tpu.memory_space<vmem>>, vector<1x4x8x32xbf16>
    %67 = vector.shape_cast %66 : vector<1x4x8x32xbf16> to vector<4x8x32xbf16>
    %68 = vector.shape_cast %67 : vector<4x8x32xbf16> to vector<32x32xbf16>
    %c1_49 = arith.constant 1 : index
    %c0_50 = arith.constant 0 : index
    %c0_51 = arith.constant 0 : index
    %c0_52 = arith.constant 0 : index
    %69 = vector.load %arg11[%c1_49, %c0_50, %c0_51, %c0_52] : memref<4x6x9x32xbf16, #tpu.memory_space<vmem>>, vector<1x4x8x32xbf16>
    %70 = vector.shape_cast %69 : vector<1x4x8x32xbf16> to vector<4x8x32xbf16>
    %71 = vector.shape_cast %70 : vector<4x8x32xbf16> to vector<32x32xbf16>
    %c0_53 = arith.constant 0 : index
    %c0_54 = arith.constant 0 : index
    %c0_55 = arith.constant 0 : index
    %c0_56 = arith.constant 0 : index
    %72 = vector.load %arg11[%c0_53, %c0_54, %c0_55, %c0_56] : memref<4x6x9x32xbf16, #tpu.memory_space<vmem>>, vector<1x4x8x32xbf16>
    %73 = vector.shape_cast %72 : vector<1x4x8x32xbf16> to vector<4x8x32xbf16>
    %74 = vector.shape_cast %73 : vector<4x8x32xbf16> to vector<32x32xbf16>
    %c1_57 = arith.constant 1 : index
    %c0_58 = arith.constant 0 : index
    %c1_59 = arith.constant 1 : index
    %c0_60 = arith.constant 0 : index
    %75 = vector.load %arg11[%c1_57, %c0_58, %c1_59, %c0_60] : memref<4x6x9x32xbf16, #tpu.memory_space<vmem>>, vector<1x4x8x32xbf16>
    %76 = vector.shape_cast %75 : vector<1x4x8x32xbf16> to vector<4x8x32xbf16>
    %77 = vector.shape_cast %76 : vector<4x8x32xbf16> to vector<32x32xbf16>
    %c3_61 = arith.constant 3 : index
    %c1_62 = arith.constant 1 : index
    %c0_63 = arith.constant 0 : index
    %c0_64 = arith.constant 0 : index
    %78 = vector.load %arg11[%c3_61, %c1_62, %c0_63, %c0_64] : memref<4x6x9x32xbf16, #tpu.memory_space<vmem>>, vector<1x4x8x32xbf16>
    %79 = vector.shape_cast %78 : vector<1x4x8x32xbf16> to vector<4x8x32xbf16>
    %80 = vector.shape_cast %79 : vector<4x8x32xbf16> to vector<32x32xbf16>
    %c2_65 = arith.constant 2 : index
    %c1_66 = arith.constant 1 : index
    %c0_67 = arith.constant 0 : index
    %c0_68 = arith.constant 0 : index
    %81 = vector.load %arg11[%c2_65, %c1_66, %c0_67, %c0_68] : memref<4x6x9x32xbf16, #tpu.memory_space<vmem>>, vector<1x4x8x32xbf16>
    %82 = vector.shape_cast %81 : vector<1x4x8x32xbf16> to vector<4x8x32xbf16>
    %83 = vector.shape_cast %82 : vector<4x8x32xbf16> to vector<32x32xbf16>
    %c3_69 = arith.constant 3 : index
    %c1_70 = arith.constant 1 : index
    %c1_71 = arith.constant 1 : index
    %c0_72 = arith.constant 0 : index
    %84 = vector.load %arg11[%c3_69, %c1_70, %c1_71, %c0_72] : memref<4x6x9x32xbf16, #tpu.memory_space<vmem>>, vector<1x4x8x32xbf16>
    %85 = vector.shape_cast %84 : vector<1x4x8x32xbf16> to vector<4x8x32xbf16>
    %86 = vector.shape_cast %85 : vector<4x8x32xbf16> to vector<32x32xbf16>
    %87 = tpu.concatenate %62, %65, %68, %71, %74, %77, %80, %83, %86 in 1 : vector<32x32xbf16>, vector<32x32xbf16>, vector<32x32xbf16>, vector<32x32xbf16>, vector<32x32xbf16>, vector<32x32xbf16>, vector<32x32xbf16>, vector<32x32xbf16>, vector<32x32xbf16> -> vector<32x288xbf16>
    %c0_73 = arith.constant 0 : index
    %c0_74 = arith.constant 0 : index
    %88 = vector.load %arg5[%c0_73, %c0_74] : memref<288x32xbf16, #tpu.memory_space<vmem>>, vector<288x32xbf16>
    %cst_75 = arith.constant dense<0.000000e+00> : vector<32x32xf32>
    %89 = tpu.matmul %87, %88, %cst_75 {dimension_numbers = #tpu.dot_dimension_numbers<[1], [0], [0], [1], [0, 0, 1, 1], [], []>} : vector<32x288xbf16>, vector<288x32xbf16>, vector<32x32xf32> -> vector<32x32xf32>
    %c0_76 = arith.constant 0 : index
    %c0_77 = arith.constant 0 : index
    %90 = vector.load %arg6[%c0_76, %c0_77] : memref<1x32xf32, #tpu.memory_space<vmem>>, vector<1x32xf32>
    %91 = vector.broadcast %90 : vector<1x32xf32> to vector<32x32xf32>
    %92 = arith.addf %89, %91 : vector<32x32xf32>
    %cst_78 = arith.constant 0.000000e+00 : f32
    %93 = vector.broadcast %cst_78 : f32 to vector<32x32xf32>
    %94 = arith.maximumf %92, %93 : vector<32x32xf32>
    %95 = arith.truncf %94 : vector<32x32xf32> to vector<32x32xbf16>
    %c0_79 = arith.constant 0 : index
    %c0_80 = arith.constant 0 : index
    %96 = vector.load %arg7[%c0_79, %c0_80] : memref<32x128xbf16, #tpu.memory_space<vmem>>, vector<32x128xbf16>
    %cst_81 = arith.constant dense<0.000000e+00> : vector<32x128xf32>
    %97 = tpu.matmul %95, %96, %cst_81 {dimension_numbers = #tpu.dot_dimension_numbers<[1], [0], [0], [1], [0, 0, 1, 1], [], []>} : vector<32x32xbf16>, vector<32x128xbf16>, vector<32x128xf32> -> vector<32x128xf32>
    %c0_82 = arith.constant 0 : index
    %c0_83 = arith.constant 0 : index
    %98 = vector.load %arg8[%c0_82, %c0_83] : memref<1x128xf32, #tpu.memory_space<vmem>>, vector<1x128xf32>
    %99 = vector.broadcast %98 : vector<1x128xf32> to vector<32x128xf32>
    %100 = arith.addf %97, %99 : vector<32x128xf32>
    %c0_84 = arith.constant 0 : index
    %c0_85 = arith.constant 0 : index
    %101 = arith.index_cast %0 : i32 to index
    %c0_86 = arith.constant 0 : index
    %c0_87 = arith.constant 0 : index
    %102 = vector.load %arg2[%c0_84, %c0_85, %101, %c0_86, %c0_87] : memref<1x4x8x8x64xbf16, #tpu.memory_space<vmem>>, vector<1x1x4x8x64xbf16>
    %103 = vector.shape_cast %102 : vector<1x1x4x8x64xbf16> to vector<4x8x64xbf16>
    %104 = vector.shape_cast %103 : vector<4x8x64xbf16> to vector<32x64xbf16>
    %c0_88 = arith.constant 0 : index
    %c0_89 = arith.constant 0 : index
    %105 = vector.load %arg9[%c0_88, %c0_89] : memref<64x128xbf16, #tpu.memory_space<vmem>>, vector<64x128xbf16>
    %cst_90 = arith.constant dense<0.000000e+00> : vector<32x128xf32>
    %106 = tpu.matmul %104, %105, %cst_90 {dimension_numbers = #tpu.dot_dimension_numbers<[1], [0], [0], [1], [0, 0, 1, 1], [], []>} : vector<32x64xbf16>, vector<64x128xbf16>, vector<32x128xf32> -> vector<32x128xf32>
    %107 = arith.addf %100, %106 : vector<32x128xf32>
    %cst_91 = arith.constant 0.000000e+00 : f32
    %108 = vector.broadcast %cst_91 : f32 to vector<32x128xf32>
    %109 = arith.maximumf %107, %108 : vector<32x128xf32>
    %110 = vector.shape_cast %109 : vector<32x128xf32> to vector<4x8x128xf32>
    %c0_92 = arith.constant 0 : index
    %c0_93 = arith.constant 0 : index
    %c0_94 = arith.constant 0 : index
    %c0_95 = arith.constant 0 : index
    %111 = vector.load %arg10[%c0_92, %c0_93, %c0_94, %c0_95] : memref<1x4x8x128xf32, #tpu.memory_space<vmem>>, vector<1x4x8x128xf32>
    %112 = vector.shape_cast %111 : vector<1x4x8x128xf32> to vector<4x8x128xf32>
    %113 = vector.shape_cast %110 : vector<4x8x128xf32> to vector<1x4x8x128xf32>
    tpu.vector_store %arg10[%c0_92, %c0_93, %c0_94, %c0_95], %113 {strides = array<i32>} : memref<1x4x8x128xf32, #tpu.memory_space<vmem>>, vector<1x4x8x128xf32>,
    return
  }
  func.func @transform_0(%arg0: i32, %arg1: i32) -> (i32, i32, i32, i32, i32) {
    %c0_i32 = arith.constant 0 : i32
    %c0_i32_0 = arith.constant 0 : i32
    %c0_i32_1 = arith.constant 0 : i32
    %c0_i32_2 = arith.constant 0 : i32
    %c0_i32_3 = arith.constant 0 : i32
    return %arg0, %c0_i32, %c0_i32_0, %c0_i32_1, %c0_i32_2 : i32, i32, i32, i32, i32
  }
  func.func @transform_1(%arg0: i32, %arg1: i32) -> (i32, i32) {
    %c0_i32 = arith.constant 0 : i32
    %c0_i32_0 = arith.constant 0 : i32
    %c0_i32_1 = arith.constant 0 : i32
    return %c0_i32, %c0_i32_0 : i32, i32
  }
  func.func @transform_2(%arg0: i32, %arg1: i32) -> (i32, i32) {
    %c0_i32 = arith.constant 0 : i32
    %c0_i32_0 = arith.constant 0 : i32
    %c0_i32_1 = arith.constant 0 : i32
    return %c0_i32, %c0_i32_0 : i32, i32
  }
  func.func @transform_3(%arg0: i32, %arg1: i32) -> (i32, i32) {
    %c0_i32 = arith.constant 0 : i32
    %c0_i32_0 = arith.constant 0 : i32
    %c0_i32_1 = arith.constant 0 : i32
    return %c0_i32, %c0_i32_0 : i32, i32
  }
  func.func @transform_4(%arg0: i32, %arg1: i32) -> (i32, i32) {
    %c0_i32 = arith.constant 0 : i32
    %c0_i32_0 = arith.constant 0 : i32
    %c0_i32_1 = arith.constant 0 : i32
    return %c0_i32, %c0_i32_0 : i32, i32
  }
  func.func @transform_5(%arg0: i32, %arg1: i32) -> (i32, i32) {
    %c0_i32 = arith.constant 0 : i32
    %c0_i32_0 = arith.constant 0 : i32
    %c0_i32_1 = arith.constant 0 : i32
    return %c0_i32, %c0_i32_0 : i32, i32
  }
  func.func @transform_6(%arg0: i32, %arg1: i32) -> (i32, i32) {
    %c0_i32 = arith.constant 0 : i32
    %c0_i32_0 = arith.constant 0 : i32
    %c0_i32_1 = arith.constant 0 : i32
    return %c0_i32, %c0_i32_0 : i32, i32
  }
  func.func @transform_7(%arg0: i32, %arg1: i32) -> (i32, i32) {
    %c0_i32 = arith.constant 0 : i32
    %c0_i32_0 = arith.constant 0 : i32
    %c0_i32_1 = arith.constant 0 : i32
    return %c0_i32, %c0_i32_0 : i32, i32
  }
  func.func @transform_8(%arg0: i32, %arg1: i32) -> (i32, i32, i32, i32) {
    %c0_i32 = arith.constant 0 : i32
    %c0_i32_0 = arith.constant 0 : i32
    %c0_i32_1 = arith.constant 0 : i32
    return %arg0, %arg1, %c0_i32, %c0_i32_0 : i32, i32, i32, i32
  }
}

</mosaic_0001>

<bundles_post_ra>
// kernel: tpu_custom_call.1
= control target key start
LH: loop header
LB: loop body
LE: loop exit
PB: predicated region body
PF: predicated region fallthrough
CT: control target
= control target key end

     0   :  { %s3292_s0 = inlined_call_operand.hbm [shape: bf16[2,4,8,8,64], index: 0, kind: input, shape index: {}]   ;;  %s3293_s1 = inlined_call_operand.vmem [shape: bf16[64,32], index: 1, kind: input, shape index: {}]   ;;  %s3294_s2 = inlined_call_operand.vmem [shape: f32[1,32], index: 2, kind: input, shape index: {}]   ;;  %s3295_s3 = inlined_call_operand.vmem [shape: bf16[288,32], index: 3, kind: input, shape index: {}]   ;;  %s3296_s4 = inlined_call_operand.vmem [shape: f32[1,32], index: 4, kind: input, shape index: {}]   ;;  %s3297_s5 = inlined_call_operand.vmem [shape: bf16[32,128], index: 5, kind: input, shape index: {}]   ;;  %s3298_s6 = inlined_call_operand.vmem [shape: f32[1,128], index: 6, kind: input, shape index: {}]   ;;  %s3299_s7 = inlined_call_operand.vmem [shape: bf16[64,128], index: 7, kind: input, shape index: {}]   ;;  %s3300_s8 = inlined_call_operand.hbm [shape: f32[2,8,8,128], index: 8, kind: output, shape index: {}]  }
   0x1   :  { %3308 = sst [smem:[#allocation15_spill]] %s3292_s0 }
   0x2   :  { %3309 = sst [smem:[#allocation16_spill]] %s3298_s6 }
   0x3   :  { %3310 = sst [smem:[#allocation17_spill]] %s3300_s8 }
   0x4   :  { %13 = vsyncpa [#allocation4], 0 }
   0x5   :  { %15 = vsyncpa [#allocation4 + $0x1], 0 }
   0x6   :  { %16 = vsyncpa [#allocation5], 0 }
   0x7   :  { %18 = vsyncpa [#allocation5 + $0x1], 0  ;;  %s2612_s27 = smov 0   ;;  %s2614_s28 = smov 0  }
   0x8   :  { %s2616_s29 = smov 0   ;;  %s2618_s30 = smov 0  }
   0x9   :  { %s2620_s9 = smov 0   ;;  %s2622_s10 = smov 0  }
   0xa   :  { %s2624_s11 = smov 0   ;;  %s2626_s12 = smov 0  }
   0xb   :  { %s2628_s13 = smov 0   ;;  %s2630_s14 = smov 0  }
   0xc   :  { %s2632_s15 = smov 0  }
   0xd LB: > { %3311 = sst [smem:[#allocation9_spill]] %s2533_s10  ;;  %s1884_s16 = sadd.s32 4294967295, %s2553_s15   ;;  %s2553_s15 = sphi %s2632_s15, %s24_s15   ;;  %s2549_s14 = sphi %s2630_s14, %s3347_s14   ;;  %s2545_s13 = sphi %s2628_s13, %s3346_s13   ;;  %s2541_s12 = sphi %s2626_s12, %s3338_s12   ;;  %s2537_s11 = sphi %s2624_s11, %s3337_s11   ;;  %s2533_s10 = sphi %s2622_s10, %s3336_s10   ;;  %s2529_s9 = sphi %s2620_s9, %s3345_s9   ;;  %s2525_s30 = sphi %s2618_s30, %s3344_s30   ;;  %s2521_s29 = sphi %s2616_s29, %s3343_s29   ;;  %s2517_s28 = sphi %s2614_s28, %s3342_s28   ;;  %s2513_s27 = sphi %s2612_s27, %s3341_s27  }
   0xe   : > { %3312 = sst [smem:[#allocation10_spill]] %s2545_s13  ;;  %s1885_s17 = sadd.s32 4294967294, %s2553_s15  }
   0xf   : > { %3313 = sst [smem:[#allocation11_spill]] %s2549_s14  ;;  %s33_s18 = sadd.s32 1, %s2545_s13 }
  0x10   : > { %s36_s19 = sadd.s32 1, %s2549_s14  ;;  %p34_p0 = scmp.ge.s32.totalorder %s33_s18, 2 }
  0x11   : > { %s43_s20 = sadd.s32 1, %s2533_s10  ;;  %p50_p1 = scmp.ne.s32.totalorder %s2533_s10, %s2529_s9 }
  0x12   : > { %p51_p2 = scmp.eq.s32.totalorder %s2553_s15, 0  ;;  %s3349_s18 = smov (%p34_p0, %s33_s18), 0 }
  0x13   : > { %3314 = sst [smem:[#allocation12_spill]] %s3349_s18  ;;  %s3351_s19 = smov (!%p34_p0, %s36_s19), %s2549_s14 }
  0x14   : > { %p2676_p3 = por %p51_p2, %p50_p1  ;;  %p56_p4 = scmp.ne.s32.totalorder %s2529_s9, %s2525_s30 }
  0x15   : > { %p38_p5 = scmp.ge.s32.totalorder %s3351_s19, 2  ;;  %p57_p6 = scmp.eq.s32.totalorder %s1884_s16, 0 }
  0x16   : > { %s214_s22 = ssub.s32 %s2545_s13, %s3349_s18  ;;  %s218_s23 = sadd.s32 1, %s2521_s29 }
  0x17   : > { %s3353_s19 = smov (%p38_p5, %s3351_s19), 0  ;;  %p2686_p7 = por %p57_p6, %p56_p4 }
  0x18   : > { %3316 = sst [smem:[#allocation13_spill]] %s3353_s19  ;;  %p228_p8 = scmp.ne.s32.totalorder %s2521_s29, %s2517_s28 }
  0x19   : > { %s40_s25 = ssub.s32 %s2549_s14, %s3353_s19  ;;  %p229_p9 = scmp.eq.s32.totalorder %s1884_s16, 3 }
  0x1a   : > { %p41_p10 = scmp.eq.s32.totalorder %s40_s25, 0  ;;  %s215_s26 = sor.u32 %s214_s22, %s40_s25 }
  0x1b   : > { %p216_p11 = scmp.eq.s32.totalorder %s215_s26, 0  ;;  %p2694_p12 = por %p229_p9, %p228_p8 }
  0x1c   : > { %s2699_s18 = scalar_select %p41_p10, %s2533_s10, %s43_s20  }
  0x1d   : > { %s3318_s30 = scalar_select %p2694_p12, 1, 0 }
  0x1e   : > { %3319 = sst [smem:[#allocation14_spill]] %s2699_s18  ;;  %p234_p13 = scmp.ne.s32.totalorder %s2517_s28, %s2513_s27 }
  0x1f   : > { %s2702_s13 = scalar_select %p216_p11, %s2521_s29, %s218_s23  }
  0x20   : > { %p235_p0 = scmp.eq.s32.totalorder %s1885_s17, 3  ;;  %p2249_p1 = scmp.lt.s32.totalorder %s2553_s15, 4 }
  0x21   : > { %s276_s16 = sand.u32 1, %s2533_s10   ;;  %s2074_s25 = sshll.u32 %s2549_s14, 11 }
  0x22   : > { %p2707_p2 = por %p235_p0, %p234_p13  ;;  %s1888_s22 = sshll.u32 %s276_s16, 7 }
  0x23   : > { %s3321_s0 = sld [smem:[#allocation15_spill]]  ;;  %s280_s20 = scalar_lea.vmem [#allocation3], %s1888_s22 }
  0x24   : > { %s3320_s8 = scalar_select %p2707_p2, 1, 0 }
  0x25   : > { %s287_s23 = sshll.u32 %s280_s20, 4  ;;  %p2722_p4 = pnand %p2249_p1, %p2676_p3  ;;  %s2718_s23 = int_to_ptr.vmem [resolvable:$true] %s287_s23 }
  0x26   : > { %s2727_s14 = scalar_lea.sflag [#allocation4], %s276_s16 }
  0x27   : > { %p2403_p8 = pneg %p2722_p4 }
  0x29   : > { %s2716_s6 = scalar_lea.hbm %s3321_s0, %s2074_s25  ;;  %s2406_s21 = scalar_lea.hbm %s3321_s0, 4096 }
  0x2a   : > { %s2401_s19 = scalar_lea.hbm %s2716_s6, 2048  ;;  %p2407_p3 = scmp.lt.u32.totalorder %s2716_s6, %s3321_s0 }
  0x2b   : > { %p2402_p6 = scmp.ne.s32.totalorder %s2716_s6, %s2401_s19  ;;  %p2408_p11 = scmp.lt.u32.totalorder %s2406_s21, %s2401_s19 }
  0x2c   : > { %p2410_p0 = scmp.lt.u32.totalorder %s2401_s19, %s2716_s6 }
  0x2d   : > { %p2404_p9 = pnand %p2403_p8, %p2402_p6  ;;  %p2409_p13 = por %p2408_p11, %p2407_p3 }
  0x2f   : > { %p2405_p10 = pneg %p2404_p9  ;;  %p2411_p1 = por %p2410_p0, %p2409_p13 }
  0x31   : > { %p2412_p5 = pnand %p2411_p1, %p2405_p10 }
  0x33   : > { %2415 = shalt.err (!%p2412_p5)
}
  0x34   : > { %s2416_s16 = scalar_lea.vmem %s2718_s23, 2048  ;;  %s2555_s22 = smov [#allocation3]  }
  0x35   : > { %p2417_p6 = scmp.ne.s32.totalorder %s2718_s23, %s2416_s16  ;;  %s2421_s25 = sshll.u32 %s2555_s22, 4  ;;  %s2422_s25 = int_to_ptr.vmem [resolvable:$false] %s2421_s25 }
  0x36   : > { %s2423_s26 = scalar_lea.vmem %s2422_s25, 4096  ;;  %p2424_p12 = scmp.lt.s32.totalorder %s2718_s23, %s2422_s25 }
  0x37   : > { %p2419_p9 = pnand %p2417_p6, %p2403_p8  ;;  %p2425_p3 = scmp.lt.s32.totalorder %s2423_s26, %s2416_s16 }
  0x39   : > { %p2420_p2 = pneg %p2419_p9  ;;  %p2426_p11 = por %p2425_p3, %p2424_p12 }
  0x3b   : > { %p2427_p13 = pnand %p2426_p11, %p2420_p2 }
  0x3d   : > { %2430 = shalt.err (!%p2427_p13)
}
  0x3e   : > { %s2556_s19 = smov 64   ;;  %s2557_s21 = smov 4  }
  0x3f   : > { %2244 = dma.hbm_to_vmem [thread:$0]  (!%p2722_p4), %s2716_s6, 2048, %s2718_s23, %s2727_s14, %s2556_s19, %s2556_s19, %s2557_s21  }
  0x40   : > { %p295_p5 = scmp.lt.s32.totalorder %s2553_s15, 5  ;;  %p3323_p8 = scmp.ge.s32.totalorder %s2553_s15, 1 }
  0x42   : > { %p296_p10 = pnand %p3323_p8, %p295_p5 }
  0x43   : > { %s301_s20 = sand.u32 (!%p296_p10), 1, %s2529_s9  }
  0x44   : > { %299 = sbr.rel (%p296_p10) target bundleno = 1026 (0x402), region = 52  ;;  %s1892_s16 = sshll.u32 (!%p296_p10), %s301_s20, 7 }
  0x45   : > { %s302_s22 = scalar_lea.sflag (!%p296_p10), [#allocation4], %s301_s20  ;;  %s2759_s25 = scalar_lea.vmem (!%p296_p10), [#allocation3], %s1892_s16 }
  0x4b   : > { %2504 = dma.done.wait (%p2686_p7), %s302_s22, 2048  }
  0x4c   : > { %2506 = vsyncadd (%p2686_p7), %s302_s22, 4294965248  ;;  %s2766_s26 = sshll.u32 %s2537_s11, 2  ;;  %v2558_v0 = vmov 0.0   ;;  %vm2559_vm0 = vmmov 0   ;;  %v2349_v1 = vld [vmem:[%s3293_s1] sm:$0xff]   ;;  %v2350_v2 = vld [vmem:[%s3293_s1 + $0x8] sm:$0xff]  }
  0x4d   : > { %2157 = vmatprep.subr.bf16.mxu0 %v2558_v0  ;;  %2165 = vmatprep.mubr.msk.bf16.mxu0 %vm2559_vm0, %v2558_v0  ;;  %p441_p12 = scmp.gt.s32.totalorder %s2766_s26, 0  ;;  %p1895_p2 = scmp.lt.s32.totalorder %s2766_s26, 4  ;;  %v2351_v3 = vld [vmem:[%s3293_s1 + $0x10] sm:$0xff]   ;;  %v2352_v4 = vld [vmem:[%s3293_s1 + $0x18] sm:$0xff]   ;;  %vm570_vm1 = vcmask 523264   ;;  %vm527_vm2 = vcmask 1043456  }
  0x4e   : > { %s2772_s6 = sadd.s32 4294967295, %s2766_s26  ;;  %2158 = vmatpush3.bf16.msra.mxu0 %v2349_v1  ;;  %vm343_vm3 = vcmask 253952   ;;  %vm344_vm4 = vsmask.f32 256  ;;  %v346_v17 = vld [vmem:[#allocation2 + $0x4] sm:$0x1] }
  0x4f   : > { %s442_s14 = scalar_select %p441_p12, %s2766_s26, 0  ;;  %2159 = vmatprep.subr.bf16.mxu0 %v2558_v0  ;;  %vm2825_vm5 = vmand %vm343_vm3, %vm344_vm4  ;;  %v350_v18 = vld [vmem:[#allocation2 + $0xc] sm:$0x1]  ;;  %vm341_vm6 = vcmask 257024   ;;  %v354_v21 = vld [vmem:[#allocation2 + $0x14] sm:$0x1] }
  0x50   : > { %p460_p7 = scmp.gt.s32.totalorder %s2772_s6, 0  ;;  %p1907_p4 = scmp.lt.s32.totalorder %s2772_s6, 3  ;;  %v347_v19 = vsel %vm2825_vm5, 0, %v346_v17  ;;  %v351_v20 = vsel %vm2825_vm5, 0, %v350_v18  ;;  %v2560_v22 = vmov 0   ;;  %v355_v23 = vsel %vm2825_vm5, 0, %v354_v21 }
  0x51   : > { %s3355_s14 = smov (!%p1895_p2, %s442_s14), 4  ;;  %342 = vst.msk [vmem:[#allocation2] sm:$0xf] %vm341_vm6, %v2560_v22  ;;  %348 = vst [vmem:[#allocation2 + $0x4] sm:$0x1] %v347_v19  ;;  %v2376_v19 = vld [vmem:[%s3295_s3 + $0x10] sm:$0xff]  }
  0x52   : > { %s461_s24 = scalar_select %p460_p7, %s2772_s6, 0  ;;  %2160 = vmatpush3.bf16.msra.mxu0 %v2350_v2  ;;  %349 = vst.msk [vmem:[#allocation2 + $0x8] sm:$0xf] %vm341_vm6, %v2560_v22  ;;  %352 = vst [vmem:[#allocation2 + $0xc] sm:$0x1] %v351_v20  ;;  %v2377_v21 = vld [vmem:[%s3295_s3 + $0x58] sm:$0xff]  }
  0x53   : > { %s1900_s19 = sshll.u32 %s3355_s14, 2  ;;  %2161 = vmatprep.subr.bf16.mxu0 %v2558_v0  ;;  %353 = vst.msk [vmem:[#allocation2 + $0x10] sm:$0xf] %vm341_vm6, %v2560_v22  ;;  %357 = vst.msk [vmem:[#allocation2 + $0x18] sm:$0xf] %vm341_vm6, %v2560_v22  ;;  %s2561_s18 = smov 64  }
  0x54   : > { %s447_s16 = scalar_lea.vmem %s2759_s25, %s1900_s19 [#allocation3]  ;;  %s3357_s24 = smov (!%p1907_p4, %s461_s24), 3  ;;  %v358_v24 = vld [vmem:[#allocation2 + $0x1c] sm:$0x1]  ;;  %361 = vst.msk [vmem:[#allocation2 + $0x20] sm:$0xf] %vm341_vm6, %v2560_v22  ;;  %vm1266_vm12 = vcmask 261120  }
  0x55   : > { %s1912_s0 = sshll.u32 %s3357_s24, 2  ;;  %v2353_v5 = vld [vmem:[%s447_s16] sm:$0xff]   ;;  %v2354_v6 = vld [vmem:[%s447_s16 + $0x8] sm:$0xff]   ;;  %365 = vst.msk [vmem:[#allocation2 + $0x28] sm:$0xf] %vm341_vm6, %v2560_v22  ;;  %v359_v26 = vsel %vm2825_vm5, 0, %v358_v24  ;;  %s3328_s20 = ssub.s32 %s3357_s24, %s2772_s6 }
  0x56   : > { %s2797_s23 = scalar_lea.vmem %s2759_s25, %s1912_s0 [#allocation3]  ;;  %2162 = vmatpush3.bf16.msra.mxu0 %v2351_v3  ;;  %v2355_v7 = vld [vmem:[%s447_s16 + $0x20] sm:$0xff]   ;;  %v2356_v8 = vld [vmem:[%s447_s16 + $0x28] sm:$0xff]   ;;  %369 = vst.msk [vmem:[#allocation2 + $0x30] sm:$0xf] %vm341_vm6, %v2560_v22  ;;  %373 = vst.msk [vmem:[#allocation2 + $0x38] sm:$0xf] %vm341_vm6, %v2560_v22  ;;  %s445_s0 = ssub.s32 %s3355_s14, %s2766_s26 }
  0x57   : > { %2163 = vmatprep.subr.bf16.mxu0 %v2558_v0  ;;  %v2357_v9 = vld [vmem:[%s2797_s23 + $0x40] sm:$0xff]   ;;  %v2358_v10 = vld [vmem:[%s2797_s23 + $0x48] sm:$0xff]   ;;  %v2359_v11 = vld [vmem:[%s2797_s23 + $0x50] ss:$0 sps:$4 sm:$0xff]   ;;  %377 = vst.msk [vmem:[#allocation2 + $0x40] sm:$0xf] %vm341_vm6, %v2560_v22 }
  0x58   : > { %v2360_v12 = vld [vmem:[%s2797_s23 + $0x60] ss:$0 sps:$4 sm:$0xff]   ;;  %v2361_v14 = vld [vmem:[%s2797_s23 + $0x64] sm:$0xff]   ;;  %v2362_v15 = vld [vmem:[%s2797_s23 + $0x6c] sm:$0xff]   ;;  %381 = vst.msk [vmem:[#allocation2 + $0x48] sm:$0xf] %vm341_vm6, %v2560_v22 }
  0x59   : > { %v530_v13 = vsel %vm527_vm2, %v2359_v11, %v2360_v12  ;;  %v362_v25 = vld [vmem:[#allocation2 + $0x24] sm:$0x1]  ;;  %385 = vst.msk [vmem:[#allocation2 + $0x50] sm:$0xf] %vm341_vm6, %v2560_v22  ;;  %389 = vst.msk [vmem:[#allocation2 + $0x58] sm:$0xf] %vm341_vm6, %v2560_v22 }
  0x5a   : > { %2164 = vmatpush3.bf16.msra.mxu0 %v2352_v4  ;;  %393 = vst.msk [vmem:[#allocation2 + $0x60] sm:$0xf] %vm341_vm6, %v2560_v22  ;;  %397 = vst.msk [vmem:[#allocation2 + $0x68] sm:$0xf] %vm341_vm6, %v2560_v22  ;;  %v363_v27 = vsel %vm2825_vm5, 0, %v362_v25  ;;  %v2371_v4 = vld [vmem:[%s3295_s3 + $0x40] sm:$0xff]  }
  0x5b   : > { %401 = vst.msk [vmem:[#allocation2 + $0x70] sm:$0xf] %vm341_vm6, %v2560_v22  ;;  %405 = vst.msk [vmem:[#allocation2 + $0x78] sm:$0xf] %vm341_vm6, %v2560_v22  ;;  %v366_v28 = vld [vmem:[#allocation2 + $0x2c] sm:$0x1]  ;;  %2115 = vmatprep.subr.bf16.mxu1 %v2371_v4 }
  0x5c   : > { %409 = vst.msk [vmem:[#allocation2 + $0x80] sm:$0xf] %vm341_vm6, %v2560_v22  ;;  %413 = vst.msk [vmem:[#allocation2 + $0x88] sm:$0xf] %vm341_vm6, %v2560_v22  ;;  %v370_v29 = vld [vmem:[#allocation2 + $0x34] sm:$0x1] }
  0x5d   : > { %2166 = vmatmul.mubr.msk.bf16.vlgmr.msra.gmra.mrb[0].mxu0 %vm570_vm1, %v2353_v5  ;;  %417 = vst.msk [vmem:[#allocation2 + $0x90] sm:$0xf] %vm341_vm6, %v2560_v22  ;;  %421 = vst.msk [vmem:[#allocation2 + $0x98] sm:$0xf] %vm341_vm6, %v2560_v22  ;;  %v367_v30 = vsel %vm2825_vm5, 0, %v366_v28  ;;  %v371_v31 = vsel %vm2825_vm5, 0, %v370_v29 }
  0x5e   : > { %2169 = vmatprep.mubr.msk.bf16.mxu0 %vm2559_vm0, %v2558_v0  ;;  %425 = vst.msk [vmem:[#allocation2 + $0xa0] sm:$0xf] %vm341_vm6, %v2560_v22  ;;  %429 = vst.msk [vmem:[#allocation2 + $0xa8] sm:$0xf] %vm341_vm6, %v2560_v22  ;;  %v374_v32 = vld [vmem:[#allocation2 + $0x3c] sm:$0x1] }
  0x5f   : > { %433 = vst.msk [vmem:[#allocation2 + $0xb0] sm:$0xf] %vm341_vm6, %v2560_v22  ;;  %437 = vst.msk [vmem:[#allocation2 + $0xb8] sm:$0xf] %vm341_vm6, %v2560_v22  ;;  %v378_v33 = vld [vmem:[#allocation2 + $0x44] sm:$0x1] }
  0x60   : > { %356 = vst [vmem:[#allocation2 + $0x14] sm:$0x1] %v355_v23  ;;  %360 = vst [vmem:[#allocation2 + $0x1c] sm:$0x1] %v359_v26  ;;  %v375_v34 = vsel %vm2825_vm5, 0, %v374_v32  ;;  %v379_v35 = vsel %vm2825_vm5, 0, %v378_v33 }
  0x61   : > { %364 = vst [vmem:[#allocation2 + $0x24] sm:$0x1] %v363_v27  ;;  %368 = vst [vmem:[#allocation2 + $0x2c] sm:$0x1] %v367_v30  ;;  %v382_v36 = vld [vmem:[#allocation2 + $0x4c] sm:$0x1] }
  0x62   : > { %372 = vst [vmem:[#allocation2 + $0x34] sm:$0x1] %v371_v31  ;;  %v386_v37 = vld [vmem:[#allocation2 + $0x54] sm:$0x1]  ;;  %376 = vst [vmem:[#allocation2 + $0x3c] sm:$0x1] %v375_v34 }
  0x63   : > { %380 = vst [vmem:[#allocation2 + $0x44] sm:$0x1] %v379_v35  ;;  %v383_v38 = vsel %vm2825_vm5, 0, %v382_v36  ;;  %v387_v39 = vsel %vm2825_vm5, 0, %v386_v37  ;;  %v390_v40 = vld [vmem:[#allocation2 + $0x5c] sm:$0x1] }
  0x64   : > { %v394_v41 = vld [vmem:[#allocation2 + $0x64] sm:$0x1]  ;;  %384 = vst [vmem:[#allocation2 + $0x4c] sm:$0x1] %v383_v38  ;;  %388 = vst [vmem:[#allocation2 + $0x54] sm:$0x1] %v387_v39 }
  0x65   : > { %2170 = vmatmul.mubr.msk.bf16.gmra.mrb[4].mxu0 %vm570_vm1, %v2354_v6  ;;  %v391_v42 = vsel %vm2825_vm5, 0, %v390_v40  ;;  %v395_v43 = vsel %vm2825_vm5, 0, %v394_v41  ;;  %v398_v44 = vld [vmem:[#allocation2 + $0x6c] sm:$0x1]  ;;  %v402_v45 = vld [vmem:[#allocation2 + $0x74] sm:$0x1] }
  0x66   : > { %2173 = vmatprep.mubr.msk.bf16.mxu0 %vm2559_vm0, %v2558_v0  ;;  %392 = vst [vmem:[#allocation2 + $0x5c] sm:$0x1] %v391_v42  ;;  %396 = vst [vmem:[#allocation2 + $0x64] sm:$0x1] %v395_v43  ;;  %v399_v46 = vsel %vm2825_vm5, 0, %v398_v44  ;;  %v403_v47 = vsel %vm2825_vm5, 0, %v402_v45 }
  0x67   : > { %v406_v48 = vld [vmem:[#allocation2 + $0x7c] sm:$0x1]  ;;  %v410_v49 = vld [vmem:[#allocation2 + $0x84] sm:$0x1]  ;;  %400 = vst [vmem:[#allocation2 + $0x6c] sm:$0x1] %v399_v46 }
  0x68   : > { %404 = vst [vmem:[#allocation2 + $0x74] sm:$0x1] %v403_v47  ;;  %v407_v50 = vsel %vm2825_vm5, 0, %v406_v48  ;;  %v411_v51 = vsel %vm2825_vm5, 0, %v410_v49  ;;  %v414_v52 = vld [vmem:[#allocation2 + $0x8c] sm:$0x1] }
  0x69   : > { %v418_v53 = vld [vmem:[#allocation2 + $0x94] sm:$0x1]  ;;  %408 = vst [vmem:[#allocation2 + $0x7c] sm:$0x1] %v407_v50  ;;  %412 = vst [vmem:[#allocation2 + $0x84] sm:$0x1] %v411_v51 }
  0x6a   : > { %v415_v54 = vsel %vm2825_vm5, 0, %v414_v52  ;;  %v419_v55 = vsel %vm2825_vm5, 0, %v418_v53  ;;  %v422_v56 = vld [vmem:[#allocation2 + $0x9c] sm:$0x1]  ;;  %v426_v57 = vld [vmem:[#allocation2 + $0xa4] sm:$0x1] }
  0x6b   : > { %416 = vst [vmem:[#allocation2 + $0x8c] sm:$0x1] %v415_v54  ;;  %420 = vst [vmem:[#allocation2 + $0x94] sm:$0x1] %v419_v55  ;;  %v423_v58 = vsel %vm2825_vm5, 0, %v422_v56  ;;  %v427_v59 = vsel %vm2825_vm5, 0, %v426_v57 }
  0x6c   : > { %v430_v60 = vld [vmem:[#allocation2 + $0xac] sm:$0x1]  ;;  %v434_v61 = vld [vmem:[#allocation2 + $0xb4] sm:$0x1]  ;;  %424 = vst [vmem:[#allocation2 + $0x9c] sm:$0x1] %v423_v58 }
  0x6d   : > { %2174 = vmatmul.mubr.msk.bf16.gmra.mrb[8].mxu0 %vm570_vm1, %v2355_v7  ;;  %428 = vst [vmem:[#allocation2 + $0xa4] sm:$0x1] %v427_v59  ;;  %v431_v62 = vsel %vm2825_vm5, 0, %v430_v60  ;;  %v435_v63 = vsel %vm2825_vm5, 0, %v434_v61  ;;  %v2906_v2 = vld [vmem:[%s3294_s2] ss:$0 sm:$0xff] }
  0x6e   : > { %2177 = vmatprep.mubr.msk.bf16.mxu0 %vm2559_vm0, %v2558_v0  ;;  %432 = vst [vmem:[#allocation2 + $0xac] sm:$0x1] %v431_v62  ;;  %436 = vst [vmem:[#allocation2 + $0xb4] sm:$0x1] %v435_v63  ;;  %v2372_v5 = vld [vmem:[%s3295_s3] sm:$0xff]   ;;  %v2373_v6 = vld [vmem:[%s3295_s3 + $0x48] sm:$0xff]  }
  0x6f   : > { %s2083_s22 = sshll.u32 %s445_s0, 3  ;;  %2116 = vmatpush3.bf16.msra.mxu1 %v2372_v5  ;;  %v2378_v28 = vld [vmem:[%s3295_s3 + $0x18] sm:$0xff]   ;;  %v2379_v29 = vld [vmem:[%s3295_s3 + $0x60] sm:$0xff]   ;;  %vm804_vm7 = vsmask.f32 7938  ;;  %s2094_s16 = sshll.u32 %s3328_s20, 3 }
  0x70   : > { %2117 = vmatprep.subr.bf16.mxu1 %v2373_v6  ;;  %s2925_s0 = scalar_lea.vmem [#allocation2], %s2083_s22  ;;  %v2380_v33 = vld [vmem:[%s3295_s3 + $0x20] sm:$0xff]   ;;  %vm2956_vm8 = vmand %vm341_vm6, %vm804_vm7  ;;  %s2999_s6 = scalar_lea.vmem [#allocation2], %s2094_s16  ;;  %vm966_vm9 = vsmask.f32 3328  ;;  %vm1277_vm13 = vcmask 785408  }
  0x71   : > { %vm967_vm10 = vsmask.f32 7440  ;;  %s2562_s19 = smov 32   ;;  %s2563_s20 = smov 96  }
  0x72   : > { %vm3089_vm11 = vmor %vm966_vm9, %vm967_vm10  ;;  %s335_s10 = sand.u32 1, %s2517_s28   ;;  %p3333_p1 = scmp.ne.s32.totalorder %s3318_s30, 0 }
  0x73   : > { %s3231_s22 = scalar_lea.sflag [#allocation5], %s335_s10  ;;  %s2564_s14 = smov [#allocation6]  }
  0x75   : > { %2178 = vmatmul.mubr.msk.bf16.gmra.mrb[12].mxu0 %vm570_vm1, %v2356_v8 }
  0x76   : > { %2181 = vmatprep.mubr.msk.bf16.mxu0 %vm2559_vm0, %v2558_v0 }
  0x7d   : > { %2182 = vmatmul.mubr.msk.bf16.gmra.mrb[16].mxu0 %vm570_vm1, %v2357_v9 }
  0x7e   : > { %2185 = vmatprep.mubr.msk.bf16.mxu0 %vm2559_vm0, %v2558_v0 }
  0x85   : > { %2186 = vmatmul.mubr.msk.bf16.gmra.mrb[20].mxu0 %vm570_vm1, %v2358_v10 }
  0x86   : > { %2189 = vmatprep.mubr.msk.bf16.mxu0 %vm2559_vm0, %v2558_v0 }
  0x8d   : > { %2190 = vmatmul.mubr.msk.bf16.gmra.mrb[24].mxu0 %vm570_vm1, %v530_v13  ;;  %v2374_v13 = vld [vmem:[%s3295_s3 + $0x8] sm:$0xff]  }
  0x8e   : > { %2193 = vmatprep.mubr.msk.bf16.mxu0 %vm2559_vm0, %v2558_v0  ;;  %2118 = vmatpush3.bf16.msra.mxu1 %v2374_v13 }
  0x95   : > { %2194 = vmatmul.mubr.msk.bf16.gmra.mrb[28].mxu0 %vm570_vm1, %v2361_v14  ;;  %v2375_v14 = vld [vmem:[%s3295_s3 + $0x50] sm:$0xff]  }
  0x96   : > { %2197 = vmatprep.mubr.msk.bf16.mxu0 %vm2559_vm0, %v2558_v0  ;;  %v438_v0 = vld [vmem:[#allocation2 + $0xbc] sm:$0x1]  ;;  %2119 = vmatprep.subr.bf16.mxu1 %v2375_v14 }
  0x97   : > { %v439_v1 = vsel %vm2825_vm5, 0, %v438_v0  ;;  %2120 = vmatpush3.bf16.msra.mxu1 %v2376_v19 }
  0x98   : > { %440 = vst [vmem:[#allocation2 + $0xbc] sm:$0x1] %v439_v1  ;;  %2121 = vmatprep.subr.bf16.mxu1 %v2377_v21 }
  0x9b   : > { %2122 = vmatpush3.bf16.msra.mxu1 %v2378_v28 }
  0x9c   : > { %2123 = vmatprep.subr.bf16.mxu1 %v2379_v29 }
  0x9d   : > { %2198 = vmatmul.mubr.msk.bf16.gmra.mrb[32].mxu0 %vm570_vm1, %v2362_v15 }
  0x9f   : > { %2124 = vmatpush3.bf16.msra.mxu1 %v2380_v33  ;;  %v1960_v52 = vld [vmem:[%s2925_s0 + $0x30] sm:$0xf]  ;;  %v1962_v53 = vld [vmem:[%s2925_s0 + $0x34] sm:$0x1]  ;;  %v1964_v61 = vld [vmem:[%s2925_s0 + $0x38] sm:$0xf] }
  0xa0   : > { %v1966_v62 = vld [vmem:[%s2925_s0 + $0x3c] sm:$0x1]  ;;  %v1968_v19 = vld [vmem:[%s2925_s0 + $0x40] sm:$0xf]  ;;  %v1972_v28 = vld [vmem:[%s2925_s0 + $0x48] sm:$0xf] }
  0xa1   : > { %v1974_v29 = vld [vmem:[%s2925_s0 + $0x4c] sm:$0x1] }
 0x130   : > { %v631_v3 = vpop.f32.mrb[0].mxu0 }
 0x131   : > { %v632_v7 = vadd.f32 %v2906_v2, %v631_v3  ;;  %v2167_v8 = vpop.f32.mrb[1].mxu0 }
 0x132   : > { %v634_v9 = vpop.f32.mrb[2].mxu0 }
 0x133   : > { %v702_v10 = vmax.f32 %v632_v7, 0.0  ;;  %v635_v11 = vadd.f32 %v2906_v2, %v634_v9  ;;  %v2168_v12 = vpop.f32.mrb[3].mxu0 }
 0x135   : > { %v2079_v15 = vpack.c.bf16 %v702_v10, %v702_v10  ;;  %v703_v17 = vmax.f32 %v635_v11, 0.0 }
 0x137   : > { %v2080_v18 = vpack.c.bf16 %v703_v17, %v703_v17  ;;  %746 = vst.msk [vmem:[%s2925_s0] sm:$0xf] %vm341_vm6, %v2079_v15 }
 0x138   : > { %v639_v20 = vpop.f32.mrb[4].mxu0 }
 0x139   : > { %v640_v22 = vadd.f32 %v2906_v2, %v639_v20  ;;  %v2171_v23 = vpop.f32.mrb[5].mxu0  ;;  %747 = vst.msk [vmem:[%s2925_s0 + $0x8] sm:$0xf] %vm341_vm6, %v2080_v18  ;;  %v1970_v20 = vld [vmem:[%s2925_s0 + $0x44] sm:$0x1] }
 0x13a   : > { %v642_v24 = vpop.f32.mrb[6].mxu0 }
 0x13b   : > { %v704_v25 = vmax.f32 %v640_v22, 0.0  ;;  %v643_v26 = vadd.f32 %v2906_v2, %v642_v24  ;;  %v2172_v27 = vpop.f32.mrb[7].mxu0 }
 0x13d   : > { %v2081_v30 = vpack.c.bf16 %v704_v25, %v704_v25  ;;  %v705_v31 = vmax.f32 %v643_v26, 0.0 }
 0x13f   : > { %v2082_v32 = vpack.c.bf16 %v705_v31, %v705_v31  ;;  %748 = vst.msk [vmem:[%s2925_s0 + $0x10] sm:$0xf] %vm341_vm6, %v2081_v30 }
 0x140   : > { %v647_v34 = vpop.f32.mrb[8].mxu0 }
 0x141   : > { %v648_v35 = vadd.f32 %v2906_v2, %v647_v34  ;;  %749 = vst.msk [vmem:[%s2925_s0 + $0x18] sm:$0xf] %vm341_vm6, %v2082_v32  ;;  %v2175_v36 = vpop.f32.mrb[9].mxu0 }
 0x142   : > { %v650_v37 = vpop.f32.mrb[10].mxu0 }
 0x143   : > { %v706_v38 = vmax.f32 %v648_v35, 0.0  ;;  %v651_v39 = vadd.f32 %v2906_v2, %v650_v37  ;;  %v2176_v40 = vpop.f32.mrb[11].mxu0 }
 0x145   : > { %v2084_v41 = vpack.c.bf16 %v706_v38, %v706_v38  ;;  %v707_v42 = vmax.f32 %v651_v39, 0.0 }
 0x147   : > { %v761_v43 = vshrl.u32 %v2084_v41, 16  ;;  %v2085_v44 = vpack.c.bf16 %v707_v42, %v707_v42  ;;  %v764_v47 = vshll.u32 %v2084_v41, 16 }
 0x148   : > { %v655_v45 = vpop.f32.mrb[12].mxu0 }
 0x149   : > { %v763_v46 = vrot.slane %v761_v43, 7  ;;  %v769_v48 = vshrl.u32 %v2085_v44, 16  ;;  %v656_v49 = vadd.f32 %v2906_v2, %v655_v45  ;;  %v2179_v50 = vpop.f32.mrb[13].mxu0  ;;  %v772_v54 = vshll.u32 %v2085_v44, 16 }
 0x14a   : > { %v658_v55 = vpop.f32.mrb[14].mxu0 }
 0x14b   : > { %v766_v56 = vor.u32 %v764_v47, %v763_v46  ;;  %v767_v57 = vrot.slane %v763_v46, 4  ;;  %v771_v58 = vrot.slane %v769_v48, 7  ;;  %v708_v59 = vmax.f32 %v656_v49, 0.0  ;;  %v2180_v60 = vpop.f32.mrb[15].mxu0 }
 0x14c   : > { %v659_v63 = vadd.f32 %v2906_v2, %v658_v55 }
 0x14d   : > { %v807_v0 = vsel %vm2956_vm8, %v766_v56, %v1960_v52  ;;  %v810_v1 = vsel %vm2825_vm5, %v767_v57, %v1962_v53  ;;  %v774_v3 = vor.u32 %v772_v54, %v771_v58  ;;  %v775_v4 = vrot.slane %v771_v58, 4 }
 0x14e   : > { %1961 = vst [vmem:[%s2925_s0 + $0x30] sm:$0xf] %v807_v0  ;;  %1963 = vst [vmem:[%s2925_s0 + $0x34] sm:$0x1] %v810_v1  ;;  %v2086_v5 = vpack.c.bf16 %v708_v59, %v708_v59  ;;  %v709_v6 = vmax.f32 %v659_v63, 0.0 }
 0x14f   : > { %v813_v7 = vsel %vm2956_vm8, %v774_v3, %v1964_v61  ;;  %v816_v8 = vsel %vm2825_vm5, %v775_v4, %v1966_v62 }
 0x150   : > { %1965 = vst [vmem:[%s2925_s0 + $0x38] sm:$0xf] %v813_v7  ;;  %1967 = vst [vmem:[%s2925_s0 + $0x3c] sm:$0x1] %v816_v8  ;;  %v777_v9 = vshrl.u32 %v2086_v5, 16  ;;  %v2087_v10 = vpack.c.bf16 %v709_v6, %v709_v6  ;;  %v663_v11 = vpop.f32.mrb[16].mxu0 }
 0x151   : > { %v664_v12 = vadd.f32 %v2906_v2, %v663_v11  ;;  %v2183_v13 = vpop.f32.mrb[17].mxu0  ;;  %v780_v15 = vshll.u32 %v2086_v5, 16 }
 0x152   : > { %v779_v14 = vrot.slane %v777_v9, 7  ;;  %v785_v17 = vshrl.u32 %v2087_v10, 16  ;;  %v666_v18 = vpop.f32.mrb[18].mxu0  ;;  %v788_v21 = vshll.u32 %v2087_v10, 16 }
 0x153   : > { %v667_v22 = vadd.f32 %v2906_v2, %v666_v18  ;;  %v2184_v23 = vpop.f32.mrb[19].mxu0  ;;  %v710_v27 = vmax.f32 %v664_v12, 0.0 }
 0x154   : > { %v782_v24 = vor.u32 %v780_v15, %v779_v14  ;;  %v783_v25 = vrot.slane %v779_v14, 4  ;;  %v787_v26 = vrot.slane %v785_v17, 7 }
 0x155   : > { %v711_v30 = vmax.f32 %v667_v22, 0.0  ;;  %v2089_v38 = vpack.c.bf16 %v710_v27, %v710_v27 }
 0x156   : > { %v819_v31 = vsel %vm2956_vm8, %v782_v24, %v1968_v19  ;;  %v822_v32 = vsel %vm2825_vm5, %v783_v25, %v1970_v20  ;;  %v790_v33 = vor.u32 %v788_v21, %v787_v26  ;;  %v791_v34 = vrot.slane %v787_v26, 4 }
 0x157   : > { %1969 = vst [vmem:[%s2925_s0 + $0x40] sm:$0xf] %v819_v31  ;;  %1971 = vst [vmem:[%s2925_s0 + $0x44] sm:$0x1] %v822_v32  ;;  %v2090_v35 = vpack.c.bf16 %v711_v30, %v711_v30 }
 0x158   : > { %v825_v36 = vsel %vm2956_vm8, %v790_v33, %v1972_v28  ;;  %v828_v37 = vsel %vm2825_vm5, %v791_v34, %v1974_v29  ;;  %v671_v39 = vpop.f32.mrb[20].mxu0 }
 0x159   : > { %1973 = vst [vmem:[%s2925_s0 + $0x48] sm:$0xf] %v825_v36  ;;  %1975 = vst [vmem:[%s2925_s0 + $0x4c] sm:$0x1] %v828_v37  ;;  %v672_v40 = vadd.f32 %v2906_v2, %v671_v39  ;;  %v2187_v41 = vpop.f32.mrb[21].mxu0 }
 0x15a   : > { %1983 = vst.msk [vmem:[%s2999_s6 + $0x60] sm:$0xf] %vm341_vm6, %v2089_v38  ;;  %1984 = vst.msk [vmem:[%s2999_s6 + $0x68] sm:$0xf] %vm341_vm6, %v2090_v35  ;;  %v674_v42 = vpop.f32.mrb[22].mxu0 }
 0x15b   : > { %v712_v43 = vmax.f32 %v672_v40, 0.0  ;;  %v675_v44 = vadd.f32 %v2906_v2, %v674_v42  ;;  %v2188_v45 = vpop.f32.mrb[23].mxu0 }
 0x15d   : > { %v2091_v46 = vpack.c.bf16 %v712_v43, %v712_v43  ;;  %v713_v47 = vmax.f32 %v675_v44, 0.0 }
 0x15f   : > { %1985 = vst.msk [vmem:[%s2999_s6 + $0x70] sm:$0xf] %vm341_vm6, %v2091_v46  ;;  %v2092_v48 = vpack.c.bf16 %v713_v47, %v713_v47 }
 0x160   : > { %v679_v49 = vpop.f32.mrb[24].mxu0  ;;  %v1995_v11 = vld [vmem:[%s2999_s6 + $0x90] sm:$0xf]  ;;  %v1997_v12 = vld [vmem:[%s2999_s6 + $0x94] sm:$0x1] }
 0x161   : > { %1986 = vst.msk [vmem:[%s2999_s6 + $0x78] sm:$0xf] %vm341_vm6, %v2092_v48  ;;  %v680_v50 = vadd.f32 %v2906_v2, %v679_v49  ;;  %v2191_v52 = vpop.f32.mrb[25].mxu0  ;;  %v1999_v30 = vld [vmem:[%s2999_s6 + $0x98] sm:$0xf] }
 0x162   : > { %v682_v53 = vpop.f32.mrb[26].mxu0  ;;  %v2001_v31 = vld [vmem:[%s2999_s6 + $0x9c] sm:$0x1]  ;;  %v2005_v40 = vld [vmem:[%s2999_s6 + $0xa4] sm:$0x1] }
 0x163   : > { %v714_v54 = vmax.f32 %v680_v50, 0.0  ;;  %v683_v55 = vadd.f32 %v2906_v2, %v682_v53  ;;  %v2192_v56 = vpop.f32.mrb[27].mxu0  ;;  %v2007_v53 = vld [vmem:[%s2999_s6 + $0xa8] sm:$0xf] }
 0x165   : > { %v2093_v57 = vpack.c.bf16 %v714_v54, %v714_v54  ;;  %v715_v58 = vmax.f32 %v683_v55, 0.0  ;;  %v2009_v54 = vld [vmem:[%s2999_s6 + $0xac] sm:$0x1] }
 0x167   : > { %1987 = vst.msk [vmem:[%s2999_s6 + $0x80] sm:$0xf] %vm341_vm6, %v2093_v57  ;;  %v2095_v59 = vpack.c.bf16 %v715_v58, %v715_v58 }
 0x168   : > { %v687_v60 = vpop.f32.mrb[28].mxu0 }
 0x169   : > { %v870_v61 = vshrl.u32 %v2095_v59, 16  ;;  %v688_v62 = vadd.f32 %v2906_v2, %v687_v60  ;;  %v2195_v63 = vpop.f32.mrb[29].mxu0  ;;  %v873_v3 = vshll.u32 %v2095_v59, 16  ;;  %v2011_v59 = vld [vmem:[%s2999_s6 + $0xb0] sm:$0xf] }
 0x16a   : > { %v690_v0 = vpop.f32.mrb[30].mxu0  ;;  %v2013_v60 = vld [vmem:[%s2999_s6 + $0xb4] sm:$0x1] }
 0x16b   : > { %v872_v1 = vrot.slane %v870_v61, 7  ;;  %v716_v4 = vmax.f32 %v688_v62, 0.0  ;;  %v691_v5 = vadd.f32 %v2906_v2, %v690_v0  ;;  %v2196_v6 = vpop.f32.mrb[31].mxu0  ;;  %v2382_v61 = vld [vmem:[%s3295_s3 + $0x68] sm:$0xff]  }
 0x16c   : > { %v2383_v62 = vld [vmem:[%s3295_s3 + $0x28] sm:$0xff]   ;;  %2125 = vmatprep.subr.bf16.mxu1 %v2382_v61 }
 0x16d   : > { %v875_v7 = vor.u32 %v873_v3, %v872_v1  ;;  %v876_v8 = vrot.slane %v872_v1, 4  ;;  %v2096_v9 = vpack.c.bf16 %v716_v4, %v716_v4  ;;  %v717_v10 = vmax.f32 %v691_v5, 0.0  ;;  %2126 = vmatpush3.bf16.msra.mxu1 %v2383_v62  ;;  %v2384_v1 = vld [vmem:[%s3295_s3 + $0x70] sm:$0xff]  }
 0x16e   : > { %v2385_v3 = vld [vmem:[%s3295_s3 + $0x30] sm:$0xff]   ;;  %2127 = vmatprep.subr.bf16.mxu1 %v2384_v1 }
 0x16f   : > { %v923_v13 = vsel %vm2956_vm8, %v875_v7, %v1995_v11  ;;  %v926_v14 = vsel %vm2825_vm5, %v876_v8, %v1997_v12  ;;  %v878_v15 = vshrl.u32 %v2096_v9, 16  ;;  %v2097_v17 = vpack.c.bf16 %v717_v10, %v717_v10 }
 0x170   : > { %1996 = vst [vmem:[%s2999_s6 + $0x90] sm:$0xf] %v923_v13  ;;  %1998 = vst [vmem:[%s2999_s6 + $0x94] sm:$0x1] %v926_v14  ;;  %v695_v18 = vpop.f32.mrb[32].mxu0  ;;  %v881_v20 = vshll.u32 %v2096_v9, 16 }
 0x171   : > { %v880_v19 = vrot.slane %v878_v15, 7  ;;  %v696_v21 = vadd.f32 %v2906_v2, %v695_v18  ;;  %v2199_v22 = vpop.f32.mrb[33].mxu0  ;;  %v886_v23 = vshrl.u32 %v2097_v17, 16  ;;  %v889_v33 = vshll.u32 %v2097_v17, 16  ;;  %2128 = vmatpush3.bf16.msra.mxu1 %v2385_v3  ;;  %v2388_v3 = vld [vmem:[%s3295_s3 + $0x38] sm:$0xff]  }
 0x172   : > { %v698_v24 = vpop.f32.mrb[34].mxu0 }
 0x173   : > { %v883_v25 = vor.u32 %v881_v20, %v880_v19  ;;  %v884_v26 = vrot.slane %v880_v19, 4  ;;  %v718_v27 = vmax.f32 %v696_v21, 0.0  ;;  %v699_v28 = vadd.f32 %v2906_v2, %v698_v24  ;;  %v2200_v29 = vpop.f32.mrb[35].mxu0  ;;  %v2003_v2 = vld [vmem:[%s2999_s6 + $0xa0] sm:$0xf] }
 0x174   : > { %v888_v32 = vrot.slane %v886_v23, 7 }
 0x175   : > { %v929_v34 = vsel %vm2956_vm8, %v883_v25, %v1999_v30  ;;  %v932_v35 = vsel %vm2825_vm5, %v884_v26, %v2001_v31  ;;  %v2098_v36 = vpack.c.bf16 %v718_v27, %v718_v27  ;;  %v719_v37 = vmax.f32 %v699_v28, 0.0 }
 0x176   : > { %2000 = vst [vmem:[%s2999_s6 + $0x98] sm:$0xf] %v929_v34  ;;  %2002 = vst [vmem:[%s2999_s6 + $0x9c] sm:$0x1] %v932_v35  ;;  %v891_v38 = vor.u32 %v889_v33, %v888_v32  ;;  %v892_v39 = vrot.slane %v888_v32, 4 }
 0x177   : > { %v894_v41 = vshrl.u32 %v2098_v36, 16  ;;  %v2099_v42 = vpack.c.bf16 %v719_v37, %v719_v37  ;;  %v897_v46 = vshll.u32 %v2098_v36, 16 }
 0x178   : > { %v935_v43 = vsel %vm2956_vm8, %v891_v38, %v2003_v2  ;;  %v938_v44 = vsel %vm2825_vm5, %v892_v39, %v2005_v40 }
 0x179   : > { %2004 = vst [vmem:[%s2999_s6 + $0xa0] sm:$0xf] %v935_v43  ;;  %2006 = vst [vmem:[%s2999_s6 + $0xa4] sm:$0x1] %v938_v44  ;;  %v896_v45 = vrot.slane %v894_v41, 7  ;;  %v902_v47 = vshrl.u32 %v2099_v42, 16 }
 0x17a   : > { %v905_v52 = vshll.u32 %v2099_v42, 16  ;;  %v2387_v41 = vld [vmem:[%s3295_s3 + $0x78] sm:$0xff]  }
 0x17b   : > { %v899_v48 = vor.u32 %v897_v46, %v896_v45  ;;  %v900_v49 = vrot.slane %v896_v45, 4  ;;  %v904_v50 = vrot.slane %v902_v47, 7  ;;  %2129 = vmatprep.subr.bf16.mxu1 %v2387_v41 }
 0x17c   : > { %2130 = vmatpush3.bf16.msra.mxu1 %v2388_v3 }
 0x17d   : > { %v941_v55 = vsel %vm2956_vm8, %v899_v48, %v2007_v53  ;;  %v944_v56 = vsel %vm2825_vm5, %v900_v49, %v2009_v54  ;;  %v907_v57 = vor.u32 %v905_v52, %v904_v50  ;;  %v908_v58 = vrot.slane %v904_v50, 4 }
 0x17e   : > { %2008 = vst [vmem:[%s2999_s6 + $0xa8] sm:$0xf] %v941_v55  ;;  %2010 = vst [vmem:[%s2999_s6 + $0xac] sm:$0x1] %v944_v56 }
 0x17f   : > { %v947_v63 = vsel %vm2956_vm8, %v907_v57, %v2011_v59  ;;  %v950_v0 = vsel %vm2825_vm5, %v908_v58, %v2013_v60 }
 0x180   : > { %2012 = vst [vmem:[%s2999_s6 + $0xb0] sm:$0xf] %v947_v63  ;;  %2014 = vst [vmem:[%s2999_s6 + $0xb4] sm:$0x1] %v950_v0  ;;  %s2101_s6 = sshll.u32 %s2537_s11, 4 }
 0x181   : > { %s3198_s24 = scalar_lea.vmem %s2759_s25, %s2101_s6 [#allocation3]  ;;  %s3331_s6 = sld [smem:[#allocation16_spill]] }
 0x182   : > { %s3332_s25 = sld [smem:[#allocation17_spill]] }
 0x187   : > { %v1095_v4 = vld [vmem:[#allocation2 + $0x98] sm:$0xf]  ;;  %v1096_v51 = vld [vmem:[#allocation2 + $0xa0] sm:$0xf]  ;;  %v1026_v8 = vld [vmem:[#allocation2 + $0x30] sm:$0xf] }
 0x188   : > { %v1123_v5 = vshrl.u32 %v1096_v51, 16  ;;  %v1126_v6 = vshll.u32 %v1096_v51, 16  ;;  %v2027_v16 = vcombine.low %v1095_v4, %v1096_v51  ;;  %v2364_v7 = vld [vmem:[#allocation2 + $0x60] ss:$8 sps:$4 sm:$0xff]   ;;  %v1109_v9 = vshrl.u32 %v1095_v4, 16 }
 0x189   : > { %v1112_v10 = vshll.u32 %v1095_v4, 16  ;;  %v1027_v11 = vld [vmem:[#allocation2 + $0x38] sm:$0xf]  ;;  %v1039_v12 = vshrl.u32 %v1026_v8, 16  ;;  %1184 = vrot.lane.b32.xlu0 %v2364_v7, %s2562_s19  ;;  %v1042_v20 = vshll.u32 %v1026_v8, 16  ;;  %v3111_v7 = vld [vmem:[%s3295_s3 + $0x80] sm:$0xff]  }
 0x18a   : > { %1242 = vrot.lane.b32.xlu1 %v2027_v16, %s2561_s18  ;;  %v3071_v13 = vrot.slane %v1123_v5, 4  ;;  %v3073_v14 = vrot.slane %v1126_v6, 5  ;;  %v1053_v15 = vshrl.u32 %v1027_v11, 16  ;;  %v1056_v17 = vshll.u32 %v1027_v11, 16  ;;  %v2366_v21 = vld [vmem:[#allocation2 + $0x68] ss:$8 sps:$4 sm:$0xff]   ;;  %2201 = vmatprep.subr.bf16.mxu1 %v3111_v7 }
 0x18b   : > { %v2021_v18 = vcombine.low %v1026_v8, %v1027_v11  ;;  %v1041_v19 = vrot.slane %v1039_v12, 4  ;;  %v1034_v24 = vld [vmem:[#allocation2 + $0x34] sm:$0x1]  ;;  %v1035_v25 = vld [vmem:[#allocation2 + $0x3c] sm:$0x1]  ;;  %v3076_v26 = vrot.slane %v1109_v9, 4 }
 0x18c   : > { %v1055_v22 = vrot.slane %v1053_v15, 4  ;;  %v1058_v23 = vrot.slane %v1056_v17, 5  ;;  %v1044_v27 = vrot.slane %v1042_v20, 5  ;;  %v1048_v28 = vshll.u32 %v1034_v24, 16  ;;  %v3079_v30 = vld [vmem:[#allocation2 + $0x90] sm:$0xf] }
 0x18d   : > { %v1062_v29 = vshll.u32 %v1035_v25, 16  ;;  %v3081_v31 = vrot.slane %v1112_v10, 5  ;;  %1256 = vrot.lane.b32.xlu0 %v2366_v21, %s2563_s20  ;;  %v3084_v33 = vld [vmem:[#allocation2 + $0x98] sm:$0xf]  ;;  %v962_v34 = vld [vmem:[#allocation2 + $0x94] sm:$0x1] }
 0x18e   : > { %1208 = vrot.lane.b32.xlu1 %v2021_v18, %s2563_s20  ;;  %v1059_v32 = vor.u32 %v1058_v23, %v1055_v22  ;;  %v970_v35 = vshrl.u32 %v3079_v30, 16  ;;  %v1045_v37 = vor.u32 %v1044_v27, %v1041_v19  ;;  %v1050_v38 = vrot.slane %v1048_v28, 5  ;;  %v963_v2 = vld [vmem:[#allocation2 + $0x9c] sm:$0x1]  ;;  %v1097_v46 = vld [vmem:[#allocation2 + $0xa8] sm:$0xf] }
 0x18f   : > { %v1064_v39 = vrot.slane %v1062_v29, 5  ;;  %v973_v40 = vshll.u32 %v3079_v30, 16  ;;  %v979_v44 = vshll.u32 %v962_v34, 16  ;;  %v984_v45 = vshrl.u32 %v3084_v33, 16  ;;  %v1098_v52 = vld [vmem:[#allocation2 + $0xb0] sm:$0xf] }
 0x190   : > { %v1060_v42 = vrot.slane %v1059_v32, 4  ;;  %v972_v43 = vrot.slane %v970_v35, 4  ;;  %v1046_v47 = vrot.slane %v1045_v37, 4  ;;  %v987_v49 = vshll.u32 %v3084_v33, 16  ;;  %v1106_v56 = vld [vmem:[#allocation2 + $0xac] sm:$0x1] }
 0x191   : > { %v975_v48 = vrot.slane %v973_v40, 5  ;;  %v993_v50 = vshll.u32 %v963_v2, 16  ;;  %v981_v54 = vrot.slane %v979_v44, 5  ;;  %v986_v55 = vrot.slane %v984_v45, 4  ;;  %v1107_v57 = vld [vmem:[#allocation2 + $0xb4] sm:$0x1] }
 0x192   : > { %v1065_v53 = vsel %vm3089_vm11, %v1060_v42, %v1064_v39  ;;  %v1051_v58 = vsel %vm3089_vm11, %v1046_v47, %v1050_v38  ;;  %v989_v60 = vrot.slane %v987_v49, 5  ;;  %v2028_v61 = vcombine.low %v1097_v46, %v1098_v52  ;;  %v3106_v16 = vld [vmem:[#allocation2 + $0x40] sm:$0xf]  ;;  %v3114_v12 = vld [vmem:[#allocation2 + $0x48] sm:$0xf] }
 0x193   : > { %v976_v59 = vor.u32 %v975_v48, %v972_v43  ;;  %v2025_v62 = vcombine.low %v1051_v58, %v1065_v53  ;;  %v1137_v63 = vshrl.u32 %v1097_v46, 16  ;;  %v1140_v0 = vshll.u32 %v1097_v46, 16  ;;  %v1036_v20 = vld [vmem:[#allocation2 + $0x44] sm:$0x1]  ;;  %v1037_v28 = vld [vmem:[#allocation2 + $0x4c] sm:$0x1] }
 0x194   : > { %v1146_v1 = vshll.u32 %v1106_v56, 16  ;;  %v990_v51 = vor.u32 %v989_v60, %v986_v55  ;;  %v1151_v5 = vshrl.u32 %v1098_v52, 16  ;;  %v1154_v6 = vshll.u32 %v1098_v52, 16  ;;  %v3124_v34 = vld [vmem:[#allocation2 + $0xa0] sm:$0xf] }
 0x195   : > { %v977_v4 = vrot.slane %v976_v59, 4  ;;  %1228 = vrot.lane.b32.xlu0 %v2025_v62, %s2562_s19  ;;  %v995_v8 = vrot.slane %v993_v50, 5  ;;  %v1139_v9 = vrot.slane %v1137_v63, 4  ;;  %v1142_v10 = vrot.slane %v1140_v0, 5  ;;  %v3128_v43 = vld [vmem:[#allocation2 + $0xa8] sm:$0xf] }
 0x196   : > { %v1160_v11 = vshll.u32 %v1107_v57, 16  ;;  %v991_v17 = vrot.slane %v990_v51, 4  ;;  %v1153_v18 = vrot.slane %v1151_v5, 4  ;;  %v1156_v19 = vrot.slane %v1154_v6, 5  ;;  %v2368_v50 = vld [vmem:[#allocation2 + $0x70] ss:$8 sps:$4 sm:$0xff]  }
 0x197   : > { %v982_v15 = vsel %vm3089_vm11, %v977_v4, %v981_v54  ;;  %v1143_v21 = vor.u32 %v1142_v10, %v1139_v9  ;;  %v1148_v22 = vrot.slane %v1146_v1, 5  ;;  %v1067_v23 = vshrl.u32 %v3106_v16, 16  ;;  %v964_v53 = vld [vmem:[#allocation2 + $0xa4] sm:$0x1]  ;;  %v1104_v9 = vld [vmem:[#allocation2 + $0x9c] sm:$0x1] }
 0x198   : > { %v1070_v24 = vshll.u32 %v3106_v16, 16  ;;  %v996_v25 = vsel %vm3089_vm11, %v991_v17, %v995_v8  ;;  %v1157_v27 = vor.u32 %v1156_v19, %v1153_v18  ;;  %v1076_v29 = vshll.u32 %v1036_v20, 16  ;;  %v1105_v17 = vld [vmem:[#allocation2 + $0xa4] sm:$0x1] }
 0x199   : > { %v1081_v32 = vshrl.u32 %v3114_v12, 16  ;;  %v2019_v35 = vcombine.low %v982_v15, %v996_v25  ;;  %v1144_v37 = vrot.slane %v1143_v21, 4  ;;  %1244 = vrot.lane.b32.xlu0 %v2028_v61, %s2561_s18  ;;  %v1069_v38 = vrot.slane %v1067_v23, 4  ;;  %v965_v61 = vld [vmem:[#allocation2 + $0xac] sm:$0x1] }
 0x19a   : > { %v1072_v39 = vrot.slane %v1070_v24, 5  ;;  %v1158_v2 = vrot.slane %v1157_v27, 4  ;;  %v1162_v40 = vrot.slane %v1160_v11, 5  ;;  %v1084_v42 = vshll.u32 %v3114_v12, 16 }
 0x19b   : > { %v1083_v41 = vrot.slane %v1081_v32, 4  ;;  %1194 = vrot.lane.b32.xlu1 %v2019_v35, %s2561_s18  ;;  %v1149_v44 = vsel %vm3089_vm11, %v1144_v37, %v1148_v22  ;;  %v1090_v46 = vshll.u32 %v1037_v28, 16  ;;  %v998_v47 = vshrl.u32 %v3124_v34, 16 }
 0x19c   : > { %v1073_v45 = vor.u32 %v1072_v39, %v1069_v38  ;;  %v1129_v48 = vor.u32 %v3073_v14, %v3071_v13  ;;  %v1163_v49 = vsel %vm3089_vm11, %v1158_v2, %v1162_v40  ;;  %v1086_v52 = vrot.slane %v1084_v42, 5  ;;  %v2386_v40 = vld [vmem:[#allocation2] ss:$8 sps:$4 sm:$0xff]  }
 0x19d   : > { %v1001_v54 = vshll.u32 %v3124_v34, 16  ;;  %v3139_v55 = vcombine.low %v1149_v44, %v1163_v49  ;;  %v1078_v57 = vrot.slane %v1076_v29, 5  ;;  %v1000_v58 = vrot.slane %v998_v47, 4  ;;  %v2369_v29 = vld [vmem:[#allocation2 + $0x78] ss:$8 sps:$4 sm:$0xff]  }
 0x19e   : > { %v1074_v56 = vrot.slane %v1073_v45, 4  ;;  %v1115_v59 = vor.u32 %v3081_v31, %v3076_v26  ;;  %v1087_v60 = vor.u32 %v1086_v52, %v1083_v41  ;;  %v1012_v13 = vshrl.u32 %v3128_v43, 16 }
 0x19f   : > { %v1003_v62 = vrot.slane %v1001_v54, 5  ;;  %1186 = vrot.lane.b32.xlu1 %v2368_v50, %s2562_s19  ;;  %v1092_v63 = vrot.slane %v1090_v46, 5  ;;  %v1007_v0 = vshll.u32 %v964_v53, 16  ;;  %v1015_v1 = vshll.u32 %v3128_v43, 16  ;;  %v2392_v46 = vld [vmem:[%s3295_s3 + $0x88] sm:$0xff]  }
 0x1a0   : > { %v1079_v14 = vsel %vm3089_vm11, %v1074_v56, %v1078_v57  ;;  %v1088_v3 = vrot.slane %v1087_v60, 4  ;;  %v1014_v51 = vrot.slane %v1012_v13, 4  ;;  %v2015_v26 = vcombine.low %v3079_v30, %v3084_v33  ;;  %v2391_v50 = vld [vmem:[#allocation2 + $0x10] ss:$8 sps:$4 sm:$0xff]   ;;  %v2394_v13 = vld [vmem:[%s3297_s5 + $0x8] sm:$0xff]  }
 0x1a1   : > { %v1004_v4 = vor.u32 %v1003_v62, %v1000_v58  ;;  %v1130_v31 = vrot.slane %v1129_v48, 4  ;;  %v1017_v5 = vrot.slane %v1015_v1, 5  ;;  %v1021_v6 = vshll.u32 %v965_v61, 16  ;;  %v2393_v62 = vld [vmem:[%s3297_s5] sm:$0xff]  }
 0x1a2   : > { %v2016_v8 = vcombine.low %v3124_v34, %v3128_v43  ;;  %v1116_v10 = vrot.slane %v1115_v59, 4  ;;  %v1093_v11 = vsel %vm3089_vm11, %v1088_v3, %v1092_v63  ;;  %v1118_v18 = vshll.u32 %v1104_v9, 16  ;;  %v2033_v9 = vld [vmem:[%s3296_s4] ss:$0 sm:$0xff] }
 0x1a3   : > { %v1005_v15 = vrot.slane %v1004_v4, 4  ;;  %v2026_v19 = vcombine.low %v1079_v14, %v1093_v11  ;;  %v1009_v20 = vrot.slane %v1007_v0, 5  ;;  %v1018_v21 = vor.u32 %v1017_v5, %v1014_v51  ;;  %v2395_v14 = vld [vmem:[%s3299_s7] sm:$0xff]  }
 0x1a4   : > { %v1132_v22 = vshll.u32 %v1105_v17, 16  ;;  %v1120_v23 = vrot.slane %v1118_v18, 5  ;;  %v1023_v24 = vrot.slane %v1021_v6, 5  ;;  %v2022_v37 = vcombine.low %v3106_v16, %v3114_v12 }
 0x1a5   : > { %1230 = vrot.lane.b32.xlu0 %v2026_v19, %s2562_s19  ;;  %v1010_v30 = vsel %vm3089_vm11, %v1005_v15, %v1009_v20  ;;  %v1019_v33 = vrot.slane %v1018_v21, 4  ;;  %s1893_s19 = sshll.u32 %s335_s10, 5 }
 0x1a6   : > { %v1134_v25 = vrot.slane %v1132_v22, 5  ;;  %v1121_v27 = vsel %vm3089_vm11, %v1116_v10, %v1120_v23  ;;  %s337_s23 = scalar_lea.vmem [#allocation6], %s1893_s19 }
 0x1a7   : > { %v1024_v28 = vsel %vm3089_vm11, %v1019_v33, %v1023_v24  ;;  %s1770_s11 = sshll.u32 %s337_s23, 4  ;;  %s3224_s11 = int_to_ptr.vmem [resolvable:$true] %s1770_s11 }
 0x1a8   : > { %v1135_v32 = vsel %vm3089_vm11, %v1130_v31, %v1134_v25  ;;  %v2020_v34 = vcombine.low %v1010_v30, %v1024_v28  ;;  %s2431_s21 = scalar_lea.vmem %s3224_s11, 512 }
 0x1a9   : > { %v2031_v35 = vcombine.low %v1121_v27, %v1135_v32  ;;  %1258 = vrot.lane.b32.xlu0 %v2369_v29, %s2563_s20  ;;  %p2432_p0 = scmp.ne.s32.totalorder %s3224_s11, %s2431_s21 }
 0x1aa   : > { %1196 = vrot.lane.b32.xlu1 %v2020_v34, %s2561_s18  ;;  %v2399_v34 = vld [vmem:[%s3198_s24] sm:$0xff]   ;;  %s2070_s18 = sshll.u32 %s2541_s12, 3 }
 0x1ab   : > { %s1767_s0 = sadd.s32 %s2070_s18, %s2766_s26  ;;  %p2433_p6 = pnand %p2432_p0, %p3333_p1 }
 0x1ac   : > { %s2435_s18 = sshll.u32 %s2564_s14, 4  ;;  %s2436_s18 = int_to_ptr.vmem [resolvable:$false] %s2435_s18 }
 0x1ad   : > { %p2434_p9 = pneg %p2433_p6  ;;  %s2437_s19 = scalar_lea.vmem %s2436_s18, 1024 }
 0x1ae   : > { %1210 = vrot.lane.b32.xlu1 %v2022_v37, %s2563_s20  ;;  %v2397_v37 = vld [vmem:[%s3299_s7 + $0x10] sm:$0xff]   ;;  %p2438_p3 = scmp.lt.s32.totalorder %s3224_s11, %s2436_s18  ;;  %p2439_p11 = scmp.lt.s32.totalorder %s2437_s19, %s2431_s21 }
 0x1b0   : > { %p2440_p13 = por %p2439_p11, %p2438_p3 }
 0x1b2   : > { %p2441_p5 = pnand %p2440_p13, %p2434_p9 }
 0x1fb   : > { %v1185_v38 = vpop.permute.xlu0 %1184 }
 0x1fc   : > { %v1243_v39 = vpop.permute.xlu1 %1242  ;;  %v1269_v45 = vsel %vm1266_vm12, %v2015_v26, %v1185_v38  ;;  %v2398_v38 = vld [vmem:[%s3299_s7 + $0x18] sm:$0xff]  }
 0x1ff   : > { %v1257_v2 = vpop.permute.xlu0 %1256 }
 0x200   : > { %v1209_v41 = vpop.permute.xlu1 %1208 }
 0x207   : > { %v1229_v42 = vpop.permute.xlu0 %1228 }
 0x208   : > { %v1286_v36 = vsel %vm1266_vm12, %v2386_v40, %v1229_v42 }
 0x209   : > { %v1291_v43 = vsel %vm570_vm1, %v1286_v36, %v1243_v39  ;;  %v2400_v39 = vld [vmem:[%s3198_s24 + $0x8] sm:$0xff]   ;;  %s2071_s24 = sshll.u32 %s1767_s0, 7 }
 0x20a   : > { %v1295_v44 = vsel %vm1277_vm13, %v1291_v43, %v1257_v2  ;;  %v2054_v2 = vld [vmem:[%s3331_s6] ss:$0 sm:$0xff]  ;;  %s3229_s17 = scalar_lea.hbm %s3332_s25, %s2071_s24 }
 0x20b   : > { %1489 = vmatprep.mubr.bf16.mxu1 %v1295_v44  ;;  %v1245_v48 = vpop.permute.xlu0 %1244 }
 0x20d   : > { %v1195_v16 = vpop.permute.xlu1 %1194 }
 0x20e   : > { %v1274_v12 = vsel %vm570_vm1, %v1269_v45, %v1195_v16 }
 0x20f   : > { %v1279_v47 = vsel %vm1277_vm13, %v1274_v12, %v1209_v41 }
 0x210   : > { %1490 = vmatmul.mubr.bf16.vlgmr.msra.gmra.mrb[0].mxu1 %v1279_v47 }
 0x211   : > { %2202 = vmatpush3.bf16.msra.mxu1 %v3111_v7  ;;  %v1187_v49 = vpop.permute.xlu1 %1186 }
 0x212   : > { %2203 = vmatprep.subr.bf16.mxu1 %v2392_v46  ;;  %v1272_v59 = vsel %vm1266_vm12, %v2016_v8, %v1187_v49 }
 0x215   : > { %2204 = vmatpush3.bf16.msra.mxu1 %v2392_v46 }
 0x216   : > { %2209 = vmatprep.subr.bf16.mxu1 %v2393_v62 }
 0x217   : > { %v1231_v52 = vpop.permute.xlu0 %1230 }
 0x218   : > { %v1289_v53 = vsel %vm1266_vm12, %v2391_v50, %v1231_v52 }
 0x219   : > { %v1293_v56 = vsel %vm570_vm1, %v1289_v53, %v1245_v48 }
 0x21b   : > { %v1259_v54 = vpop.permute.xlu0 %1258 }
 0x21c   : > { %v1197_v57 = vpop.permute.xlu1 %1196  ;;  %v1298_v58 = vsel %vm1277_vm13, %v1293_v56, %v1259_v54 }
 0x21d   : > { %1497 = vmatprep.mubr.bf16.mxu1 %v1298_v58  ;;  %v1276_v7 = vsel %vm570_vm1, %v1272_v59, %v1197_v57 }
 0x220   : > { %v1211_v60 = vpop.permute.xlu1 %1210 }
 0x221   : > { %v1282_v61 = vsel %vm1277_vm13, %v1276_v7, %v1211_v60 }
 0x222   : > { %1498 = vmatmul.mubr.bf16.gmra.mrb[4].mxu1 %v1282_v61 }
 0x223   : > { %2205 = vmatprep.mubr.msk.bf16.mxu1 %vm1266_vm12, %v2031_v35  ;;  %v2396_v35 = vld [vmem:[%s3299_s7 + $0x8] sm:$0xff]  }
 0x22a   : > { %2206 = vmatmul.mubr.msk.bf16.vlgmr.msra.gmra.mrb[8].mxu1 %vm1266_vm12, %v3139_v55 }
 0x22b   : > { %2210 = vmatpush3.bf16.msra.mxu1 %v2393_v62 }
 0x22c   : > { %2211 = vmatprep.subr.bf16.mxu1 %v2394_v13 }
 0x22f   : > { %2212 = vmatpush3.bf16.msra.mxu1 %v2394_v13 }
 0x230   : > { %2217 = vmatprep.subr.bf16.mxu1 %v2395_v14 }
 0x2e3   : > { %v2131_v55 = vpop.f32.mrb[0].mxu1 }
 0x2e4   : > { %v2132_v63 = vpop.f32.mrb[1].mxu1 }
 0x2e5   : > { %v2133_v0 = vadd.f32 %v2132_v63, %v2131_v55  ;;  %v2134_v1 = vpop.f32.mrb[2].mxu1 }
 0x2e6   : > { %v2135_v3 = vpop.f32.mrb[3].mxu1 }
 0x2e7   : > { %v2136_v4 = vadd.f32 %v2135_v3, %v2134_v1  ;;  %v1492_v15 = vadd.f32 %v2133_v0, %v2033_v9 }
 0x2e9   : > { %v1495_v22 = vadd.f32 %v2136_v4, %v2033_v9 }
 0x2f5   : > { %v2137_v51 = vpop.f32.mrb[4].mxu1 }
 0x2f6   : > { %v2138_v26 = vpop.f32.mrb[5].mxu1 }
 0x2f7   : > { %v2139_v31 = vadd.f32 %v2138_v26, %v2137_v51  ;;  %v2140_v5 = vpop.f32.mrb[6].mxu1 }
 0x2f8   : > { %v2141_v6 = vpop.f32.mrb[7].mxu1 }
 0x2f9   : > { %v2142_v8 = vadd.f32 %v2141_v6, %v2140_v5  ;;  %v1500_v10 = vadd.f32 %v2139_v31, %v2033_v9 }
 0x2fb   : > { %v1503_v19 = vadd.f32 %v2142_v8, %v2033_v9 }
 0x2fd   : > { %v2207_v11 = vpop.f32.mrb[8].mxu1 }
 0x2fe   : > { %v1549_v17 = vadd.f32 %v2207_v11, %v1500_v10  ;;  %v1540_v18 = vpop.f32.mrb[9].mxu1 }
 0x2ff   : > { %v1541_v20 = vadd.f32 %v1540_v18, %v1492_v15  ;;  %v2208_v21 = vpop.f32.mrb[10].mxu1 }
 0x300   : > { %v1552_v23 = vadd.f32 %v2208_v21, %v1503_v19  ;;  %v1543_v30 = vpop.f32.mrb[11].mxu1  ;;  %v1557_v24 = vmax.f32 %v1549_v17, 0.0 }
 0x301   : > { %v1544_v33 = vadd.f32 %v1543_v30, %v1495_v22  ;;  %v1555_v27 = vmax.f32 %v1541_v20, 0.0 }
 0x302   : > { %v1558_v25 = vmax.f32 %v1552_v23, 0.0 }
 0x303   : > { %v1556_v28 = vmax.f32 %v1544_v33, 0.0 }
 0x304   : > { %v1560_v29 = vpack.c.bf16 %v1558_v25, %v1557_v24 }
 0x305   : > { %v1559_v32 = vpack.c.bf16 %v1556_v28, %v1555_v27 }
 0x307   : > { %2213 = vmatprep.mubr.msk.bf16.mxu1 %vm1266_vm12, %v1559_v32 }
 0x308   : > { %2214 = vmatmul.mubr.msk.bf16.vlgmr.msra.gmra.mrb[12].mxu1 %vm1266_vm12, %v1560_v29 }
 0x309   : > { %2218 = vmatpush3.bf16.msra.mxu1 %v2395_v14  ;;  %2225 = vmatprep.mubr.msk.bf16.mxu1 %vm570_vm1, %v2399_v34 }
 0x30a   : > { %2219 = vmatprep.subr.bf16.mxu1 %v2396_v35 }
 0x30d   : > { %2220 = vmatpush3.bf16.msra.mxu1 %v2396_v35 }
 0x30e   : > { %2221 = vmatprep.subr.bf16.mxu1 %v2397_v37 }
 0x311   : > { %2222 = vmatpush3.bf16.msra.mxu1 %v2397_v37 }
 0x312   : > { %2223 = vmatprep.subr.bf16.mxu1 %v2398_v38 }
 0x315   : > { %2224 = vmatpush3.bf16.msra.mxu1 %v2398_v38 }
 0x318   : > { %2226 = vmatmul.mubr.msk.bf16.vlgmr.msra.gmra.mrb[12].mxu1 %vm570_vm1, %v2400_v39 }
 0x3eb   : > { %v2227_v40 = vpop.f32.mrb[12].mxu1 }
 0x3ec   : > { %v2229_v41 = vadd.f32 %v2227_v40, %v2054_v2  ;;  %v1727_v42 = vpop.f32.mrb[13].mxu1 }
 0x3ed   : > { %v2230_v36 = vadd.f32 %v2054_v2, %v1727_v42  ;;  %v2228_v43 = vpop.f32.mrb[14].mxu1 }
 0x3ee   : > { %v1748_v44 = vmax.f32 %v2229_v41, 0.0  ;;  %v2231_v45 = vadd.f32 %v2228_v43, %v2054_v2  ;;  %v1730_v16 = vpop.f32.mrb[15].mxu1 }
 0x3ef   : > { %v1746_v12 = vmax.f32 %v2230_v36, 0.0  ;;  %v2232_v46 = vadd.f32 %v2054_v2, %v1730_v16 }
 0x3f0   : > { %1752 = vst [vmem:[%s337_s23 + $0x10] sm:$0xff] %v1748_v44  ;;  %v1749_v47 = vmax.f32 %v2231_v45, 0.0 }
 0x3f1   : > { %1750 = vst [vmem:[%s337_s23] sm:$0xff] %v1746_v12  ;;  %v1747_v48 = vmax.f32 %v2232_v46, 0.0 }
 0x3f2   : > { %1753 = vst [vmem:[%s337_s23 + $0x18] sm:$0xff] %v1749_v47 }
 0x3f3   : > { %1751 = vst [vmem:[%s337_s23 + $0x8] sm:$0xff] %v1747_v48 }
 0x3f4   : > { %2444 = shalt.err (!%p2441_p5)
}
 0x3f5   : > { %s2445_s10 = scalar_lea.hbm %s3229_s17, 512  ;;  %s2449_s6 = scalar_lea.hbm %s3332_s25, 2048 }
 0x3f6   : > { %p2446_p8 = scmp.ne.s32.totalorder %s3229_s17, %s2445_s10  ;;  %p2450_p2 = scmp.lt.u32.totalorder %s3229_s17, %s3332_s25 }
 0x3f7   : > { %p2451_p7 = scmp.lt.u32.totalorder %s2449_s6, %s2445_s10  ;;  %p2453_p0 = scmp.lt.u32.totalorder %s2445_s10, %s3229_s17 }
 0x3f8   : > { %p2447_p10 = pnand %p2446_p8, %p3333_p1 }
 0x3f9   : > { %p2452_p4 = por %p2451_p7, %p2450_p2 }
 0x3fa   : > { %p2448_p12 = pneg %p2447_p10 }
 0x3fb   : > { %p2454_p6 = por %p2453_p0, %p2452_p4 }
 0x3fd   : > { %p2455_p9 = pnand %p2454_p6, %p2448_p12 }
 0x3ff   : > { %2458 = shalt.err (!%p2455_p9)
}
 0x400   : > { %s2565_s24 = smov 128   ;;  %s2566_s12 = smov 8  }
 0x401   : > { %2239 = dma.vmem_to_hbm [thread:$0]  (%p3333_p1), %s3224_s11, 512, %s3229_s17, %s3231_s22, %s2565_s24, %s2565_s24, %s2566_s12  }
 0x402 PF: > { %p2250_p3 = scmp.ge.s32.totalorder %s2553_s15, 2  ;;  %s1785_s26 = sand.u32 1, %s2513_s27  }
 0x403   : > { %p3334_p11 = scmp.ne.s32.totalorder %s3320_s8, 0  ;;  %s1786_s21 = scalar_lea.sflag [#allocation5], %s1785_s26 }
 0x405   : > { %p2246_p13 = pnand %p2250_p3, %p3334_p11 }
 0x407   : > { %2508 = dma.done.wait (!%p2246_p13), %s1786_s21, 512  }
 0x408   : > { %2510 = vsyncadd (!%p2246_p13), %s1786_s21, 4294966784  ;;  %s24_s15 = sadd.s32 1, %s2553_s15   ;;  %s3335_s14 = sld [smem:[#allocation9_spill]] }
 0x409   : > { %p21_p5 = scmp.ge.s32.totalorder %s24_s15, 6   ;;  %s3336_s10 = sld [smem:[#allocation14_spill]] }
 0x40a   : > { %s3337_s11 = sld [smem:[#allocation10_spill]]  ;;  %s3338_s12 = sld [smem:[#allocation11_spill]] }
 0x40b   : > { %s3339_s17 = sld [smem:[#allocation12_spill]]  ;;  %s3340_s22 = sld [smem:[#allocation13_spill]] }
 0x40c   : > { %s3341_s27 = smov %s2517_s28  ;;  %s3342_s28 = smov %s2521_s29 }
 0x40d   : > { %s3343_s29 = smov %s2702_s13  ;;  %s3344_s30 = smov %s2529_s9 }
 0x40e   : > { %s3345_s9 = smov %s3335_s14  ;;  %23 = sbr.rel (!%p21_p5) target bundleno = 13 (0xd), region = 111 }
 0x411   : > { %s3346_s13 = smov %s3339_s17  ;;  %s3347_s14 = smov %s3340_s22 }
 0x415   :  { %1791 = vsyncpa [#allocation4], 1 }
 0x416   :  { %1793 = vsyncpa [#allocation4 + $0x1], 1 }
 0x417   :  { %1794 = vsyncpa [#allocation5], 1 }
 0x418   :  { %1796 = vsyncpa [#allocation5 + $0x1], 1 }

</bundles_post_ra>
